<compile_context>
chip_gen: v7x
topology: tpu7x:2x2x1
jax: 0.10.0
libtpu: 0.0.40
codegen_flags: <defaults>
</compile_context>

<pallas_src>
import functools

import jax
import jax.numpy as jnp
from jax.experimental import pallas as pl
from jax.experimental.pallas import tpu as pltpu

EPS = 1e-5


def _vmem_limit_bytes():
    # Generation-aware scoped-VMEM limit.  This kernel needs well under 1 MiB
    # of VMEM, so cap at <= half the physical per-core VMEM: safe on v7x
    # (64 MiB physical) as well as v5e/v6e (128 MiB).
    try:
        cap = int(pltpu.get_tpu_info().vmem_capacity_bytes)
    except Exception:  # pragma: no cover - conservative fallback
        cap = 64 * 1024 * 1024
    return int(max(8 * 1024 * 1024, min(32 * 1024 * 1024, cap // 2)))


# ---------------------------------------------------------------------------
# The fused kernel: one invocation == one batch element, whole ACRBlock.
# ---------------------------------------------------------------------------
def _acr_block_kernel(
    x_ref,
    w3a_ref, s3a_ref, b3a_ref, w1a_ref, s1a_ref, b1a_ref,
    se1w1_ref, se1b1_ref, se1w2_ref, se1b2_ref,
    w3b_ref, s3b_ref, b3b_ref, w1b_ref, s1b_ref, b1b_ref,
    se2w1_ref, se2b1_ref, se2w2_ref, se2b2_ref,
    wc_ref, bc_ref,
    se3w1_ref, se3b1_ref, se3w2_ref, se3b2_ref,
    out_ref, *, h, w):
    hw = h * w
    inv_hw = 1.0 / float(hw)
    cin = x_ref.shape[1]
    x = x_ref[...].reshape(cin, hw)                 # (Cin, HW) f32; also residual

    # 1-pixel-halo validity masks shared by all three 3x3 convs, (1, HW) bools.
    lane = jax.lax.broadcasted_iota(jnp.int32, (1, hw), 1)
    wpos = (lane & (w - 1)) if (w & (w - 1)) == 0 else lane % w
    hmask = {-1: lane >= w, 1: lane < hw - w}       # source row inside image
    wmask = {-1: wpos >= 1, 1: wpos <= w - 2}       # source col inside image

    def conv3x3(act, w_ref):
        # act: (Cin, HW) f32.  w_ref: (Cout, 9*Cin) bf16, K ordered (ky, kx, c).
        # Each tap is a lane-roll of the flattened image (+ boundary mask); the
        # 9 slabs are stacked on the sublane axis -> one K-packed MXU matmul.
        slabs = []
        for di in (-1, 0, 1):
            for dj in (-1, 0, 1):
                shift = di * w + dj                 # source pixel = p + shift
                s = act if shift == 0 else pltpu.roll(act, (-shift) % hw, axis=1)
                m = None
                if di != 0:
                    m = hmask[di]
                if dj != 0:
                    m = wmask[dj] if m is None else jnp.logical_and(m, wmask[dj])
                if m is not None:
                    s = jnp.where(m, s, 0.0)
                slabs.append(s)
        packed = jnp.concatenate(slabs, axis=0).astype(w_ref.dtype)  # (9*Cin, HW)
        return jnp.dot(w_ref[...], packed, preferred_element_type=jnp.float32)

    def conv1x1(act, w_ref):
        return jnp.dot(w_ref[...], act.astype(w_ref.dtype),
                       preferred_element_type=jnp.float32)

    def se_gate(act, w1_ref, b1_ref, w2_ref, b2_ref):
        # AdaptiveAvgPool2d(1) -> 1x1 conv -> ReLU -> 1x1 conv -> Sigmoid.
        p = jnp.sum(act, axis=1, keepdims=True) * inv_hw              # (C, 1)
        hid = jnp.dot(w1_ref[...], p, preferred_element_type=jnp.float32)
        hid = jnp.maximum(hid + b1_ref[...], 0.0)
        g = jnp.dot(w2_ref[...], hid, preferred_element_type=jnp.float32)
        return jax.nn.sigmoid(g + b2_ref[...])                        # (Cg, 1)

    # ---- g1 = se(x);  stage A: left1(3x3+BN+ReLU) -> left2(1x1+BN) ---------
    g1 = se_gate(x, se1w1_ref, se1b1_ref, se1w2_ref, se1b2_ref)       # (4*in_c, 1)
    xa = conv3x3(x, w3a_ref) * s3a_ref[...] + b3a_ref[...]            # (2*in_c, HW)
    xa = jnp.maximum(xa, 0.0)
    xa = conv1x1(xa, w1a_ref) * s1a_ref[...] + b1a_ref[...]           # (4*in_c, HW)
    g2 = se_gate(xa, se2w1_ref, se2b1_ref, se2w2_ref, se2b2_ref)      # pre-gate pool
    out1 = g1 * xa

    # ---- stage B: left3(3x3+BN) + residual -> left4(1x1+BN) ----------------
    xb = conv3x3(out1, w3b_ref) * s3b_ref[...] + b3b_ref[...]         # (out_c, HW)
    xb = xb + x                                                       # shortcut=None
    xb = conv1x1(xb, w1b_ref) * s1b_ref[...] + b1b_ref[...]           # (2*out_c, HW)
    g3 = se_gate(xb, se3w1_ref, se3b1_ref, se3w2_ref, se3b2_ref)      # pre-gate pool
    out2 = g2 * xb

    # ---- stage C: left5+left6 folded into a single 3x3 conv + bias ---------
    xc = conv3x3(out2, wc_ref) + bc_ref[...]                          # (out_c, HW)
    y = jnp.maximum(g3 * xc + x, 0.0)                                 # gate+res+ReLU
    out_ref[...] = y.reshape(out_ref.shape)


# ---------------------------------------------------------------------------
# Wrapper
# ---------------------------------------------------------------------------
def acr_block_forward(x_nchw, params, *, in_c, out_c):
    assert out_c == in_c, "residual adds require out_channel == in_channel"
    n, c, h, w = x_nchw.shape
    assert c == in_c
    hw = h * w
    x3d = x_nchw.reshape(n, c, hw).astype(jnp.float32)   # NCHW is already chan-major

    in_specs = [pl.BlockSpec((1, in_c, hw), lambda b: (b, 0, 0))]
    for arr in params:                                   # weights: whole-array blocks
        in_specs.append(pl.BlockSpec(arr.shape, lambda b: (0, 0)))

    # Cost estimate: conv FLOPs + gating/BN epilogues; HBM traffic is just the
    # input, output and weights (everything else stays on-chip).
    conv = lambda ci, co: 2 * hw * 9 * ci * co
    mm = lambda ci, co: 2 * hw * ci * co
    flops_img = (conv(in_c, 2 * in_c) + mm(2 * in_c, 4 * in_c)
                 + conv(4 * in_c, out_c) + mm(out_c, 2 * out_c)
                 + conv(2 * out_c, out_c)
                 + 8 * hw * (4 * in_c + 2 * out_c + out_c))
    weight_bytes = sum(int(p.size) * p.dtype.itemsize for p in params)
    cost = pl.CostEstimate(
        flops=int(n * flops_img),
        transcendentals=int(n * (4 * in_c + 2 * out_c + out_c)),
        bytes_accessed=int(x3d.size * 4 + n * out_c * hw * 4 + weight_bytes))

    out = pl.pallas_call(
        functools.partial(_acr_block_kernel, h=h, w=w),
        grid=(n,),
        in_specs=in_specs,
        out_specs=pl.BlockSpec((1, out_c, hw), lambda b: (b, 0, 0)),
        out_shape=jax.ShapeDtypeStruct((n, out_c, hw), jnp.float32),
        compiler_params=pltpu.CompilerParams(
            dimension_semantics=("parallel",),
            vmem_limit_bytes=_vmem_limit_bytes()),
        cost_estimate=cost,
    )(x3d, *params)
    return out.reshape(n, out_c, h, w)                   # already NCHW


# ---------------------------------------------------------------------------
# Parameter construction (random init, BN folded in eval mode)
# ---------------------------------------------------------------------------
def _fold_bn(key, conv_bias, c):
    ks = jax.random.split(key, 5)
    cb = (0.05 * jax.random.normal(ks[0], (c,), jnp.float32) if conv_bias
          else jnp.zeros((c,), jnp.float32))
    gamma = 1.0 + 0.1 * jax.random.normal(ks[1], (c,), jnp.float32)
    beta = 0.1 * jax.random.normal(ks[2], (c,), jnp.float32)
    mean = 0.1 * jax.random.normal(ks[3], (c,), jnp.float32)
    var = jax.random.uniform(ks[4], (c,), jnp.float32, minval=0.5, maxval=1.5)
    scale = gamma / jnp.sqrt(var + EPS)
    bias = beta + (cb - mean) * scale
    return scale, bias


def _conv3x3_mat(key, cin, cout):
    # PyTorch layout (cout, cin, 3, 3) -> kernel layout (cout, 9*cin), K=(ky,kx,c).
    wt = 0.05 * jax.random.normal(key, (cout, cin, 3, 3), jnp.float32)
    return jnp.transpose(wt, (0, 2, 3, 1)).reshape(cout, 9 * cin)


def _conv1x1_mat(key, cin, cout):
    return 0.05 * jax.random.normal(key, (cout, cin), jnp.float32)


def _se_params(key, cin, cmid, cout):
    ks = jax.random.split(key, 4)
    w1 = 0.05 * jax.random.normal(ks[0], (cmid, cin), jnp.float32)
    b1 = 0.05 * jax.random.normal(ks[1], (cmid,), jnp.float32)
    w2 = 0.05 * jax.random.normal(ks[2], (cout, cmid), jnp.float32)
    b2 = 0.05 * jax.random.normal(ks[3], (cout,), jnp.float32)
    return w1, b1.reshape(-1, 1), w2, b2.reshape(-1, 1)


def init_acr_params(key, in_c, out_c):
    ks = jax.random.split(key, 15)
    # left1 (3x3, bias=False)+BN ; left2 (1x1, bias)+BN
    w3a = _conv3x3_mat(ks[0], in_c, 2 * in_c)
    s3a, b3a = _fold_bn(ks[1], False, 2 * in_c)
    w1a = _conv1x1_mat(ks[2], 2 * in_c, 4 * in_c)
    s1a, b1a = _fold_bn(ks[3], True, 4 * in_c)
    # left3 (3x3, bias=False)+BN ; left4 (1x1, bias)+BN
    w3b = _conv3x3_mat(ks[4], 4 * in_c, out_c)
    s3b, b3b = _fold_bn(ks[5], False, out_c)
    w1b = _conv1x1_mat(ks[6], out_c, 2 * out_c)
    s1b, b1b = _fold_bn(ks[7], True, 2 * out_c)
    # left5 (3x3, bias=False)+BN ; left6 (1x1, bias)+BN, folded offline into one
    # 3x3 conv + bias (no nonlinearity between them).
    w3c = _conv3x3_mat(ks[8], 2 * out_c, 4 * out_c)
    s3c, b3c = _fold_bn(ks[9], False, 4 * out_c)
    w1c = _conv1x1_mat(ks[10], 4 * out_c, out_c)
    s1c, b1c = _fold_bn(ks[11], True, out_c)
    wc = (s1c[:, None] * w1c) @ (s3c[:, None] * w3c)          # (out_c, 9*2*out_c)
    bc = s1c * (w1c @ b3c) + b1c                              # (out_c,)
    # SE branches
    se1 = _se_params(ks[12], in_c, out_c // 4, 4 * in_c)
    se2 = _se_params(ks[13], 4 * in_c, in_c // 4, 2 * out_c)
    se3 = _se_params(ks[14], 2 * out_c, out_c // 4, out_c)

    col = lambda v: v.reshape(-1, 1).astype(jnp.float32)
    bf = lambda v: v.astype(jnp.bfloat16)
    return (
        bf(w3a), col(s3a), col(b3a), bf(w1a), col(s1a), col(b1a),
        *se1,
        bf(w3b), col(s3b), col(b3b), bf(w1b), col(s1b), col(b1b),
        *se2,
        bf(wc), col(bc),
        *se3,
    )


# ---------------------------------------------------------------------------
if __name__ == "__main__":
    IN_C = 8
    OUT_C = 8            # residual adds require out_channel == in_channel
    N, H, W = 2, 16, 16

    key = jax.random.PRNGKey(0)
    k_x, k_p = jax.random.split(key)
    x = jax.random.normal(k_x, (N, IN_C, H, W), jnp.float32)   # NCHW like PyTorch
    params = init_acr_params(k_p, IN_C, OUT_C)

    fwd = jax.jit(functools.partial(acr_block_forward, in_c=IN_C, out_c=OUT_C))
    out = fwd(x, params)
    jax.block_until_ready(out)

    assert out.shape == (N, OUT_C, H, W)
    assert bool(jnp.all(out >= 0.0))   # final ReLU
    print("KERNEL_OK")
</pallas_src>

<mosaic_0001>
module attributes {stable_mosaic.version = 11 : i64} {
  func.func @_acr_block_kernel(%arg0: i32, %arg1: memref<1x8x256xf32, #tpu.memory_space<vmem>>, %arg2: memref<16x72xbf16, #tpu.memory_space<vmem>>, %arg3: memref<16x1xf32, #tpu.memory_space<vmem>>, %arg4: memref<16x1xf32, #tpu.memory_space<vmem>>, %arg5: memref<32x16xbf16, #tpu.memory_space<vmem>>, %arg6: memref<32x1xf32, #tpu.memory_space<vmem>>, %arg7: memref<32x1xf32, #tpu.memory_space<vmem>>, %arg8: memref<2x8xf32, #tpu.memory_space<vmem>>, %arg9: memref<2x1xf32, #tpu.memory_space<vmem>>, %arg10: memref<32x2xf32, #tpu.memory_space<vmem>>, %arg11: memref<32x1xf32, #tpu.memory_space<vmem>>, %arg12: memref<8x288xbf16, #tpu.memory_space<vmem>>, %arg13: memref<8x1xf32, #tpu.memory_space<vmem>>, %arg14: memref<8x1xf32, #tpu.memory_space<vmem>>, %arg15: memref<16x8xbf16, #tpu.memory_space<vmem>>, %arg16: memref<16x1xf32, #tpu.memory_space<vmem>>, %arg17: memref<16x1xf32, #tpu.memory_space<vmem>>, %arg18: memref<2x32xf32, #tpu.memory_space<vmem>>, %arg19: memref<2x1xf32, #tpu.memory_space<vmem>>, %arg20: memref<16x2xf32, #tpu.memory_space<vmem>>, %arg21: memref<16x1xf32, #tpu.memory_space<vmem>>, %arg22: memref<8x144xbf16, #tpu.memory_space<vmem>>, %arg23: memref<8x1xf32, #tpu.memory_space<vmem>>, %arg24: memref<2x16xf32, #tpu.memory_space<vmem>>, %arg25: memref<2x1xf32, #tpu.memory_space<vmem>>, %arg26: memref<8x2xf32, #tpu.memory_space<vmem>>, %arg27: memref<8x1xf32, #tpu.memory_space<vmem>>, %arg28: memref<1x8x256xf32, #tpu.memory_space<vmem>>) attributes {dimension_semantics = [#tpu.dimension_semantics<parallel>], iteration_bounds = array<i64: 2>, scalar_prefetch = 0 : i64, scratch_operands = 0 : i64, tpu.core_type = #tpu.core_type<tc>, window_params = [{transform_indices = @transform_0, window_bounds = array<i64: 1, 8, 256>}, {pipeline_mode = #tpu.pipeline_mode<synchronous>, transform_indices = @transform_1, window_bounds = array<i64: 16, 72>}, {pipeline_mode = #tpu.pipeline_mode<synchronous>, transform_indices = @transform_2, window_bounds = array<i64: 16, 1>}, {pipeline_mode = #tpu.pipeline_mode<synchronous>, transform_indices = @transform_3, window_bounds = array<i64: 16, 1>}, {pipeline_mode = #tpu.pipeline_mode<synchronous>, transform_indices = @transform_4, window_bounds = array<i64: 32, 16>}, {pipeline_mode = #tpu.pipeline_mode<synchronous>, transform_indices = @transform_5, window_bounds = array<i64: 32, 1>}, {pipeline_mode = #tpu.pipeline_mode<synchronous>, transform_indices = @transform_6, window_bounds = array<i64: 32, 1>}, {pipeline_mode = #tpu.pipeline_mode<synchronous>, transform_indices = @transform_7, window_bounds = array<i64: 2, 8>}, {pipeline_mode = #tpu.pipeline_mode<synchronous>, transform_indices = @transform_8, window_bounds = array<i64: 2, 1>}, {pipeline_mode = #tpu.pipeline_mode<synchronous>, transform_indices = @transform_9, window_bounds = array<i64: 32, 2>}, {pipeline_mode = #tpu.pipeline_mode<synchronous>, transform_indices = @transform_10, window_bounds = array<i64: 32, 1>}, {pipeline_mode = #tpu.pipeline_mode<synchronous>, transform_indices = @transform_11, window_bounds = array<i64: 8, 288>}, {pipeline_mode = #tpu.pipeline_mode<synchronous>, transform_indices = @transform_12, window_bounds = array<i64: 8, 1>}, {pipeline_mode = #tpu.pipeline_mode<synchronous>, transform_indices = @transform_13, window_bounds = array<i64: 8, 1>}, {pipeline_mode = #tpu.pipeline_mode<synchronous>, transform_indices = @transform_14, window_bounds = array<i64: 16, 8>}, {pipeline_mode = #tpu.pipeline_mode<synchronous>, transform_indices = @transform_15, window_bounds = array<i64: 16, 1>}, {pipeline_mode = #tpu.pipeline_mode<synchronous>, transform_indices = @transform_16, window_bounds = array<i64: 16, 1>}, {pipeline_mode = #tpu.pipeline_mode<synchronous>, transform_indices = @transform_17, window_bounds = array<i64: 2, 32>}, {pipeline_mode = #tpu.pipeline_mode<synchronous>, transform_indices = @transform_18, window_bounds = array<i64: 2, 1>}, {pipeline_mode = #tpu.pipeline_mode<synchronous>, transform_indices = @transform_19, window_bounds = array<i64: 16, 2>}, {pipeline_mode = #tpu.pipeline_mode<synchronous>, transform_indices = @transform_20, window_bounds = array<i64: 16, 1>}, {pipeline_mode = #tpu.pipeline_mode<synchronous>, transform_indices = @transform_21, window_bounds = array<i64: 8, 144>}, {pipeline_mode = #tpu.pipeline_mode<synchronous>, transform_indices = @transform_22, window_bounds = array<i64: 8, 1>}, {pipeline_mode = #tpu.pipeline_mode<synchronous>, transform_indices = @transform_23, window_bounds = array<i64: 2, 16>}, {pipeline_mode = #tpu.pipeline_mode<synchronous>, transform_indices = @transform_24, window_bounds = array<i64: 2, 1>}, {pipeline_mode = #tpu.pipeline_mode<synchronous>, transform_indices = @transform_25, window_bounds = array<i64: 8, 2>}, {pipeline_mode = #tpu.pipeline_mode<synchronous>, transform_indices = @transform_26, window_bounds = array<i64: 8, 1>}, {transform_indices = @transform_27, window_bounds = array<i64: 1, 8, 256>}]} {
    %c0 = arith.constant 0 : index
    %c0_0 = arith.constant 0 : index
    %c0_1 = arith.constant 0 : index
    %0 = vector.load %arg1[%c0, %c0_0, %c0_1] : memref<1x8x256xf32, #tpu.memory_space<vmem>>, vector<1x8x256xf32>
    %1 = vector.shape_cast %0 : vector<1x8x256xf32> to vector<8x256xf32>
    %2 = tpu.iota {dimensions = array<i32: 1>} : vector<1x256xi32>
    %c15_i32 = arith.constant 15 : i32
    %3 = vector.broadcast %c15_i32 : i32 to vector<1x256xi32>
    %4 = arith.andi %2, %3 : vector<1x256xi32>
    %c16_i32 = arith.constant 16 : i32
    %5 = vector.broadcast %c16_i32 : i32 to vector<1x256xi32>
    %6 = arith.cmpi sge, %2, %5 : vector<1x256xi32>
    %c240_i32 = arith.constant 240 : i32
    %7 = vector.broadcast %c240_i32 : i32 to vector<1x256xi32>
    %8 = arith.cmpi slt, %2, %7 : vector<1x256xi32>
    %c1_i32 = arith.constant 1 : i32
    %9 = vector.broadcast %c1_i32 : i32 to vector<1x256xi32>
    %10 = arith.cmpi sge, %4, %9 : vector<1x256xi32>
    %c14_i32 = arith.constant 14 : i32
    %11 = vector.broadcast %c14_i32 : i32 to vector<1x256xi32>
    %12 = arith.cmpi sle, %4, %11 : vector<1x256xi32>
    %cst = arith.constant dense<0.000000e+00> : vector<8xf32>
    %13 = vector.multi_reduction <add>, %1, %cst [1] : vector<8x256xf32> to vector<8xf32>
    %14 = vector.shape_cast %13 : vector<8xf32> to vector<8x1xf32>
    %cst_2 = arith.constant 3.906250e-03 : f32
    %15 = vector.broadcast %cst_2 : f32 to vector<8x1xf32>
    %16 = arith.mulf %14, %15 : vector<8x1xf32>
    %c0_3 = arith.constant 0 : index
    %c0_4 = arith.constant 0 : index
    %17 = vector.load %arg8[%c0_3, %c0_4] : memref<2x8xf32, #tpu.memory_space<vmem>>, vector<2x8xf32>
    %cst_5 = arith.constant dense<0.000000e+00> : vector<2x1xf32>
    %18 = tpu.matmul %17, %16, %cst_5 {dimension_numbers = #tpu.dot_dimension_numbers<[1], [0], [0], [1], [0, 0, 1, 1], [], []>} : vector<2x8xf32>, vector<8x1xf32>, vector<2x1xf32> -> vector<2x1xf32>
    %c0_6 = arith.constant 0 : index
    %c0_7 = arith.constant 0 : index
    %19 = vector.load %arg9[%c0_6, %c0_7] : memref<2x1xf32, #tpu.memory_space<vmem>>, vector<2x1xf32>
    %20 = arith.addf %18, %19 : vector<2x1xf32>
    %cst_8 = arith.constant 0.000000e+00 : f32
    %21 = vector.broadcast %cst_8 : f32 to vector<2x1xf32>
    %22 = arith.maximumf %20, %21 : vector<2x1xf32>
    %c0_9 = arith.constant 0 : index
    %c0_10 = arith.constant 0 : index
    %23 = vector.load %arg10[%c0_9, %c0_10] : memref<32x2xf32, #tpu.memory_space<vmem>>, vector<32x2xf32>
    %cst_11 = arith.constant dense<0.000000e+00> : vector<32x1xf32>
    %24 = tpu.matmul %23, %22, %cst_11 {dimension_numbers = #tpu.dot_dimension_numbers<[1], [0], [0], [1], [0, 0, 1, 1], [], []>} : vector<32x2xf32>, vector<2x1xf32>, vector<32x1xf32> -> vector<32x1xf32>
    %c0_12 = arith.constant 0 : index
    %c0_13 = arith.constant 0 : index
    %25 = vector.load %arg11[%c0_12, %c0_13] : memref<32x1xf32, #tpu.memory_space<vmem>>, vector<32x1xf32>
    %26 = arith.addf %24, %25 : vector<32x1xf32>
    %27 = arith.negf %26 : vector<32x1xf32>
    %28 = math.exp %27 : vector<32x1xf32>
    %cst_14 = arith.constant 1.000000e+00 : f32
    %29 = vector.broadcast %cst_14 : f32 to vector<32x1xf32>
    %30 = arith.addf %29, %28 : vector<32x1xf32>
    %31 = arith.divf %29, %30 : vector<32x1xf32>
    %c17_i32 = arith.constant 17 : i32
    %32 = tpu.dynamic_rotate %1 by %c17_i32 dim 1 : vector<8x256xf32>, i32 -> vector<8x256xf32>
    %33 = arith.andi %6, %10 : vector<1x256xi1>
    %cst_15 = arith.constant 0.000000e+00 : f32
    %34 = vector.shape_cast %33 : vector<1x256xi1> to vector<1x256xi1>
    %35 = vector.broadcast %34 : vector<1x256xi1> to vector<8x256xi1>
    %36 = vector.broadcast %cst_15 : f32 to vector<8x256xf32>
    %37 = arith.select %35, %32, %36 : vector<8x256xi1>, vector<8x256xf32>
    %c16_i32_16 = arith.constant 16 : i32
    %38 = tpu.dynamic_rotate %1 by %c16_i32_16 dim 1 : vector<8x256xf32>, i32 -> vector<8x256xf32>
    %cst_17 = arith.constant 0.000000e+00 : f32
    %39 = vector.shape_cast %6 : vector<1x256xi1> to vector<1x256xi1>
    %40 = vector.broadcast %39 : vector<1x256xi1> to vector<8x256xi1>
    %41 = vector.broadcast %cst_17 : f32 to vector<8x256xf32>
    %42 = arith.select %40, %38, %41 : vector<8x256xi1>, vector<8x256xf32>
    %c15_i32_18 = arith.constant 15 : i32
    %43 = tpu.dynamic_rotate %1 by %c15_i32_18 dim 1 : vector<8x256xf32>, i32 -> vector<8x256xf32>
    %44 = arith.andi %6, %12 : vector<1x256xi1>
    %cst_19 = arith.constant 0.000000e+00 : f32
    %45 = vector.shape_cast %44 : vector<1x256xi1> to vector<1x256xi1>
    %46 = vector.broadcast %45 : vector<1x256xi1> to vector<8x256xi1>
    %47 = vector.broadcast %cst_19 : f32 to vector<8x256xf32>
    %48 = arith.select %46, %43, %47 : vector<8x256xi1>, vector<8x256xf32>
    %c1_i32_20 = arith.constant 1 : i32
    %49 = tpu.dynamic_rotate %1 by %c1_i32_20 dim 1 : vector<8x256xf32>, i32 -> vector<8x256xf32>
    %cst_21 = arith.constant 0.000000e+00 : f32
    %50 = vector.shape_cast %10 : vector<1x256xi1> to vector<1x256xi1>
    %51 = vector.broadcast %50 : vector<1x256xi1> to vector<8x256xi1>
    %52 = vector.broadcast %cst_21 : f32 to vector<8x256xf32>
    %53 = arith.select %51, %49, %52 : vector<8x256xi1>, vector<8x256xf32>
    %c255_i32 = arith.constant 255 : i32
    %54 = tpu.dynamic_rotate %1 by %c255_i32 dim 1 : vector<8x256xf32>, i32 -> vector<8x256xf32>
    %cst_22 = arith.constant 0.000000e+00 : f32
    %55 = vector.shape_cast %12 : vector<1x256xi1> to vector<1x256xi1>
    %56 = vector.broadcast %55 : vector<1x256xi1> to vector<8x256xi1>
    %57 = vector.broadcast %cst_22 : f32 to vector<8x256xf32>
    %58 = arith.select %56, %54, %57 : vector<8x256xi1>, vector<8x256xf32>
    %c241_i32 = arith.constant 241 : i32
    %59 = tpu.dynamic_rotate %1 by %c241_i32 dim 1 : vector<8x256xf32>, i32 -> vector<8x256xf32>
    %60 = arith.andi %8, %10 : vector<1x256xi1>
    %cst_23 = arith.constant 0.000000e+00 : f32
    %61 = vector.shape_cast %60 : vector<1x256xi1> to vector<1x256xi1>
    %62 = vector.broadcast %61 : vector<1x256xi1> to vector<8x256xi1>
    %63 = vector.broadcast %cst_23 : f32 to vector<8x256xf32>
    %64 = arith.select %62, %59, %63 : vector<8x256xi1>, vector<8x256xf32>
    %c240_i32_24 = arith.constant 240 : i32
    %65 = tpu.dynamic_rotate %1 by %c240_i32_24 dim 1 : vector<8x256xf32>, i32 -> vector<8x256xf32>
    %cst_25 = arith.constant 0.000000e+00 : f32
    %66 = vector.shape_cast %8 : vector<1x256xi1> to vector<1x256xi1>
    %67 = vector.broadcast %66 : vector<1x256xi1> to vector<8x256xi1>
    %68 = vector.broadcast %cst_25 : f32 to vector<8x256xf32>
    %69 = arith.select %67, %65, %68 : vector<8x256xi1>, vector<8x256xf32>
    %c239_i32 = arith.constant 239 : i32
    %70 = tpu.dynamic_rotate %1 by %c239_i32 dim 1 : vector<8x256xf32>, i32 -> vector<8x256xf32>
    %71 = arith.andi %8, %12 : vector<1x256xi1>
    %cst_26 = arith.constant 0.000000e+00 : f32
    %72 = vector.shape_cast %71 : vector<1x256xi1> to vector<1x256xi1>
    %73 = vector.broadcast %72 : vector<1x256xi1> to vector<8x256xi1>
    %74 = vector.broadcast %cst_26 : f32 to vector<8x256xf32>
    %75 = arith.select %73, %70, %74 : vector<8x256xi1>, vector<8x256xf32>
    %76 = tpu.concatenate %37, %42, %48, %53, %1, %58, %64, %69, %75 in 0 : vector<8x256xf32>, vector<8x256xf32>, vector<8x256xf32>, vector<8x256xf32>, vector<8x256xf32>, vector<8x256xf32>, vector<8x256xf32>, vector<8x256xf32>, vector<8x256xf32> -> vector<72x256xf32>
    %77 = arith.truncf %76 : vector<72x256xf32> to vector<72x256xbf16>
    %c0_27 = arith.constant 0 : index
    %c0_28 = arith.constant 0 : index
    %78 = vector.load %arg2[%c0_27, %c0_28] : memref<16x72xbf16, #tpu.memory_space<vmem>>, vector<16x72xbf16>
    %cst_29 = arith.constant dense<0.000000e+00> : vector<16x256xf32>
    %79 = tpu.matmul %78, %77, %cst_29 {dimension_numbers = #tpu.dot_dimension_numbers<[1], [0], [0], [1], [0, 0, 1, 1], [], []>} : vector<16x72xbf16>, vector<72x256xbf16>, vector<16x256xf32> -> vector<16x256xf32>
    %c0_30 = arith.constant 0 : index
    %c0_31 = arith.constant 0 : index
    %80 = vector.load %arg3[%c0_30, %c0_31] : memref<16x1xf32, #tpu.memory_space<vmem>>, vector<16x1xf32>
    %81 = vector.broadcast %80 : vector<16x1xf32> to vector<16x256xf32>
    %82 = arith.mulf %79, %81 : vector<16x256xf32>
    %c0_32 = arith.constant 0 : index
    %c0_33 = arith.constant 0 : index
    %83 = vector.load %arg4[%c0_32, %c0_33] : memref<16x1xf32, #tpu.memory_space<vmem>>, vector<16x1xf32>
    %84 = vector.broadcast %83 : vector<16x1xf32> to vector<16x256xf32>
    %85 = arith.addf %82, %84 : vector<16x256xf32>
    %cst_34 = arith.constant 0.000000e+00 : f32
    %86 = vector.broadcast %cst_34 : f32 to vector<16x256xf32>
    %87 = arith.maximumf %85, %86 : vector<16x256xf32>
    %c0_35 = arith.constant 0 : index
    %c0_36 = arith.constant 0 : index
    %88 = vector.load %arg5[%c0_35, %c0_36] : memref<32x16xbf16, #tpu.memory_space<vmem>>, vector<32x16xbf16>
    %89 = arith.truncf %87 : vector<16x256xf32> to vector<16x256xbf16>
    %cst_37 = arith.constant dense<0.000000e+00> : vector<32x256xf32>
    %90 = tpu.matmul %88, %89, %cst_37 {dimension_numbers = #tpu.dot_dimension_numbers<[1], [0], [0], [1], [0, 0, 1, 1], [], []>} : vector<32x16xbf16>, vector<16x256xbf16>, vector<32x256xf32> -> vector<32x256xf32>
    %c0_38 = arith.constant 0 : index
    %c0_39 = arith.constant 0 : index
    %91 = vector.load %arg6[%c0_38, %c0_39] : memref<32x1xf32, #tpu.memory_space<vmem>>, vector<32x1xf32>
    %92 = vector.broadcast %91 : vector<32x1xf32> to vector<32x256xf32>
    %93 = arith.mulf %90, %92 : vector<32x256xf32>
    %c0_40 = arith.constant 0 : index
    %c0_41 = arith.constant 0 : index
    %94 = vector.load %arg7[%c0_40, %c0_41] : memref<32x1xf32, #tpu.memory_space<vmem>>, vector<32x1xf32>
    %95 = vector.broadcast %94 : vector<32x1xf32> to vector<32x256xf32>
    %96 = arith.addf %93, %95 : vector<32x256xf32>
    %cst_42 = arith.constant dense<0.000000e+00> : vector<32xf32>
    %97 = vector.multi_reduction <add>, %96, %cst_42 [1] : vector<32x256xf32> to vector<32xf32>
    %98 = vector.shape_cast %97 : vector<32xf32> to vector<32x1xf32>
    %cst_43 = arith.constant 3.906250e-03 : f32
    %99 = vector.broadcast %cst_43 : f32 to vector<32x1xf32>
    %100 = arith.mulf %98, %99 : vector<32x1xf32>
    %c0_44 = arith.constant 0 : index
    %c0_45 = arith.constant 0 : index
    %101 = vector.load %arg18[%c0_44, %c0_45] : memref<2x32xf32, #tpu.memory_space<vmem>>, vector<2x32xf32>
    %cst_46 = arith.constant dense<0.000000e+00> : vector<2x1xf32>
    %102 = tpu.matmul %101, %100, %cst_46 {dimension_numbers = #tpu.dot_dimension_numbers<[1], [0], [0], [1], [0, 0, 1, 1], [], []>} : vector<2x32xf32>, vector<32x1xf32>, vector<2x1xf32> -> vector<2x1xf32>
    %c0_47 = arith.constant 0 : index
    %c0_48 = arith.constant 0 : index
    %103 = vector.load %arg19[%c0_47, %c0_48] : memref<2x1xf32, #tpu.memory_space<vmem>>, vector<2x1xf32>
    %104 = arith.addf %102, %103 : vector<2x1xf32>
    %cst_49 = arith.constant 0.000000e+00 : f32
    %105 = vector.broadcast %cst_49 : f32 to vector<2x1xf32>
    %106 = arith.maximumf %104, %105 : vector<2x1xf32>
    %c0_50 = arith.constant 0 : index
    %c0_51 = arith.constant 0 : index
    %107 = vector.load %arg20[%c0_50, %c0_51] : memref<16x2xf32, #tpu.memory_space<vmem>>, vector<16x2xf32>
    %cst_52 = arith.constant dense<0.000000e+00> : vector<16x1xf32>
    %108 = tpu.matmul %107, %106, %cst_52 {dimension_numbers = #tpu.dot_dimension_numbers<[1], [0], [0], [1], [0, 0, 1, 1], [], []>} : vector<16x2xf32>, vector<2x1xf32>, vector<16x1xf32> -> vector<16x1xf32>
    %c0_53 = arith.constant 0 : index
    %c0_54 = arith.constant 0 : index
    %109 = vector.load %arg21[%c0_53, %c0_54] : memref<16x1xf32, #tpu.memory_space<vmem>>, vector<16x1xf32>
    %110 = arith.addf %108, %109 : vector<16x1xf32>
    %111 = arith.negf %110 : vector<16x1xf32>
    %112 = math.exp %111 : vector<16x1xf32>
    %cst_55 = arith.constant 1.000000e+00 : f32
    %113 = vector.broadcast %cst_55 : f32 to vector<16x1xf32>
    %114 = arith.addf %113, %112 : vector<16x1xf32>
    %115 = arith.divf %113, %114 : vector<16x1xf32>
    %116 = vector.broadcast %31 : vector<32x1xf32> to vector<32x256xf32>
    %117 = arith.mulf %116, %96 : vector<32x256xf32>
    %c17_i32_56 = arith.constant 17 : i32
    %118 = tpu.dynamic_rotate %117 by %c17_i32_56 dim 1 : vector<32x256xf32>, i32 -> vector<32x256xf32>
    %119 = arith.andi %6, %10 : vector<1x256xi1>
    %cst_57 = arith.constant 0.000000e+00 : f32
    %120 = vector.shape_cast %119 : vector<1x256xi1> to vector<1x256xi1>
    %121 = vector.broadcast %120 : vector<1x256xi1> to vector<32x256xi1>
    %122 = vector.broadcast %cst_57 : f32 to vector<32x256xf32>
    %123 = arith.select %121, %118, %122 : vector<32x256xi1>, vector<32x256xf32>
    %c16_i32_58 = arith.constant 16 : i32
    %124 = tpu.dynamic_rotate %117 by %c16_i32_58 dim 1 : vector<32x256xf32>, i32 -> vector<32x256xf32>
    %cst_59 = arith.constant 0.000000e+00 : f32
    %125 = vector.shape_cast %6 : vector<1x256xi1> to vector<1x256xi1>
    %126 = vector.broadcast %125 : vector<1x256xi1> to vector<32x256xi1>
    %127 = vector.broadcast %cst_59 : f32 to vector<32x256xf32>
    %128 = arith.select %126, %124, %127 : vector<32x256xi1>, vector<32x256xf32>
    %c15_i32_60 = arith.constant 15 : i32
    %129 = tpu.dynamic_rotate %117 by %c15_i32_60 dim 1 : vector<32x256xf32>, i32 -> vector<32x256xf32>
    %130 = arith.andi %6, %12 : vector<1x256xi1>
    %cst_61 = arith.constant 0.000000e+00 : f32
    %131 = vector.shape_cast %130 : vector<1x256xi1> to vector<1x256xi1>
    %132 = vector.broadcast %131 : vector<1x256xi1> to vector<32x256xi1>
    %133 = vector.broadcast %cst_61 : f32 to vector<32x256xf32>
    %134 = arith.select %132, %129, %133 : vector<32x256xi1>, vector<32x256xf32>
    %c1_i32_62 = arith.constant 1 : i32
    %135 = tpu.dynamic_rotate %117 by %c1_i32_62 dim 1 : vector<32x256xf32>, i32 -> vector<32x256xf32>
    %cst_63 = arith.constant 0.000000e+00 : f32
    %136 = vector.shape_cast %10 : vector<1x256xi1> to vector<1x256xi1>
    %137 = vector.broadcast %136 : vector<1x256xi1> to vector<32x256xi1>
    %138 = vector.broadcast %cst_63 : f32 to vector<32x256xf32>
    %139 = arith.select %137, %135, %138 : vector<32x256xi1>, vector<32x256xf32>
    %c255_i32_64 = arith.constant 255 : i32
    %140 = tpu.dynamic_rotate %117 by %c255_i32_64 dim 1 : vector<32x256xf32>, i32 -> vector<32x256xf32>
    %cst_65 = arith.constant 0.000000e+00 : f32
    %141 = vector.shape_cast %12 : vector<1x256xi1> to vector<1x256xi1>
    %142 = vector.broadcast %141 : vector<1x256xi1> to vector<32x256xi1>
    %143 = vector.broadcast %cst_65 : f32 to vector<32x256xf32>
    %144 = arith.select %142, %140, %143 : vector<32x256xi1>, vector<32x256xf32>
    %c241_i32_66 = arith.constant 241 : i32
    %145 = tpu.dynamic_rotate %117 by %c241_i32_66 dim 1 : vector<32x256xf32>, i32 -> vector<32x256xf32>
    %146 = arith.andi %8, %10 : vector<1x256xi1>
    %cst_67 = arith.constant 0.000000e+00 : f32
    %147 = vector.shape_cast %146 : vector<1x256xi1> to vector<1x256xi1>
    %148 = vector.broadcast %147 : vector<1x256xi1> to vector<32x256xi1>
    %149 = vector.broadcast %cst_67 : f32 to vector<32x256xf32>
    %150 = arith.select %148, %145, %149 : vector<32x256xi1>, vector<32x256xf32>
    %c240_i32_68 = arith.constant 240 : i32
    %151 = tpu.dynamic_rotate %117 by %c240_i32_68 dim 1 : vector<32x256xf32>, i32 -> vector<32x256xf32>
    %cst_69 = arith.constant 0.000000e+00 : f32
    %152 = vector.shape_cast %8 : vector<1x256xi1> to vector<1x256xi1>
    %153 = vector.broadcast %152 : vector<1x256xi1> to vector<32x256xi1>
    %154 = vector.broadcast %cst_69 : f32 to vector<32x256xf32>
    %155 = arith.select %153, %151, %154 : vector<32x256xi1>, vector<32x256xf32>
    %c239_i32_70 = arith.constant 239 : i32
    %156 = tpu.dynamic_rotate %117 by %c239_i32_70 dim 1 : vector<32x256xf32>, i32 -> vector<32x256xf32>
    %157 = arith.andi %8, %12 : vector<1x256xi1>
    %cst_71 = arith.constant 0.000000e+00 : f32
    %158 = vector.shape_cast %157 : vector<1x256xi1> to vector<1x256xi1>
    %159 = vector.broadcast %158 : vector<1x256xi1> to vector<32x256xi1>
    %160 = vector.broadcast %cst_71 : f32 to vector<32x256xf32>
    %161 = arith.select %159, %156, %160 : vector<32x256xi1>, vector<32x256xf32>
    %162 = tpu.concatenate %123, %128, %134, %139, %117, %144, %150, %155, %161 in 0 : vector<32x256xf32>, vector<32x256xf32>, vector<32x256xf32>, vector<32x256xf32>, vector<32x256xf32>, vector<32x256xf32>, vector<32x256xf32>, vector<32x256xf32>, vector<32x256xf32> -> vector<288x256xf32>
    %163 = arith.truncf %162 : vector<288x256xf32> to vector<288x256xbf16>
    %c0_72 = arith.constant 0 : index
    %c0_73 = arith.constant 0 : index
    %164 = vector.load %arg12[%c0_72, %c0_73] : memref<8x288xbf16, #tpu.memory_space<vmem>>, vector<8x288xbf16>
    %cst_74 = arith.constant dense<0.000000e+00> : vector<8x256xf32>
    %165 = tpu.matmul %164, %163, %cst_74 {dimension_numbers = #tpu.dot_dimension_numbers<[1], [0], [0], [1], [0, 0, 1, 1], [], []>} : vector<8x288xbf16>, vector<288x256xbf16>, vector<8x256xf32> -> vector<8x256xf32>
    %c0_75 = arith.constant 0 : index
    %c0_76 = arith.constant 0 : index
    %166 = vector.load %arg13[%c0_75, %c0_76] : memref<8x1xf32, #tpu.memory_space<vmem>>, vector<8x1xf32>
    %167 = vector.broadcast %166 : vector<8x1xf32> to vector<8x256xf32>
    %168 = arith.mulf %165, %167 : vector<8x256xf32>
    %c0_77 = arith.constant 0 : index
    %c0_78 = arith.constant 0 : index
    %169 = vector.load %arg14[%c0_77, %c0_78] : memref<8x1xf32, #tpu.memory_space<vmem>>, vector<8x1xf32>
    %170 = vector.broadcast %169 : vector<8x1xf32> to vector<8x256xf32>
    %171 = arith.addf %168, %170 : vector<8x256xf32>
    %172 = arith.addf %171, %1 : vector<8x256xf32>
    %c0_79 = arith.constant 0 : index
    %c0_80 = arith.constant 0 : index
    %173 = vector.load %arg15[%c0_79, %c0_80] : memref<16x8xbf16, #tpu.memory_space<vmem>>, vector<16x8xbf16>
    %174 = arith.truncf %172 : vector<8x256xf32> to vector<8x256xbf16>
    %cst_81 = arith.constant dense<0.000000e+00> : vector<16x256xf32>
    %175 = tpu.matmul %173, %174, %cst_81 {dimension_numbers = #tpu.dot_dimension_numbers<[1], [0], [0], [1], [0, 0, 1, 1], [], []>} : vector<16x8xbf16>, vector<8x256xbf16>, vector<16x256xf32> -> vector<16x256xf32>
    %c0_82 = arith.constant 0 : index
    %c0_83 = arith.constant 0 : index
    %176 = vector.load %arg16[%c0_82, %c0_83] : memref<16x1xf32, #tpu.memory_space<vmem>>, vector<16x1xf32>
    %177 = vector.broadcast %176 : vector<16x1xf32> to vector<16x256xf32>
    %178 = arith.mulf %175, %177 : vector<16x256xf32>
    %c0_84 = arith.constant 0 : index
    %c0_85 = arith.constant 0 : index
    %179 = vector.load %arg17[%c0_84, %c0_85] : memref<16x1xf32, #tpu.memory_space<vmem>>, vector<16x1xf32>
    %180 = vector.broadcast %179 : vector<16x1xf32> to vector<16x256xf32>
    %181 = arith.addf %178, %180 : vector<16x256xf32>
    %cst_86 = arith.constant dense<0.000000e+00> : vector<16xf32>
    %182 = vector.multi_reduction <add>, %181, %cst_86 [1] : vector<16x256xf32> to vector<16xf32>
    %183 = vector.shape_cast %182 : vector<16xf32> to vector<16x1xf32>
    %cst_87 = arith.constant 3.906250e-03 : f32
    %184 = vector.broadcast %cst_87 : f32 to vector<16x1xf32>
    %185 = arith.mulf %183, %184 : vector<16x1xf32>
    %c0_88 = arith.constant 0 : index
    %c0_89 = arith.constant 0 : index
    %186 = vector.load %arg24[%c0_88, %c0_89] : memref<2x16xf32, #tpu.memory_space<vmem>>, vector<2x16xf32>
    %cst_90 = arith.constant dense<0.000000e+00> : vector<2x1xf32>
    %187 = tpu.matmul %186, %185, %cst_90 {dimension_numbers = #tpu.dot_dimension_numbers<[1], [0], [0], [1], [0, 0, 1, 1], [], []>} : vector<2x16xf32>, vector<16x1xf32>, vector<2x1xf32> -> vector<2x1xf32>
    %c0_91 = arith.constant 0 : index
    %c0_92 = arith.constant 0 : index
    %188 = vector.load %arg25[%c0_91, %c0_92] : memref<2x1xf32, #tpu.memory_space<vmem>>, vector<2x1xf32>
    %189 = arith.addf %187, %188 : vector<2x1xf32>
    %cst_93 = arith.constant 0.000000e+00 : f32
    %190 = vector.broadcast %cst_93 : f32 to vector<2x1xf32>
    %191 = arith.maximumf %189, %190 : vector<2x1xf32>
    %c0_94 = arith.constant 0 : index
    %c0_95 = arith.constant 0 : index
    %192 = vector.load %arg26[%c0_94, %c0_95] : memref<8x2xf32, #tpu.memory_space<vmem>>, vector<8x2xf32>
    %cst_96 = arith.constant dense<0.000000e+00> : vector<8x1xf32>
    %193 = tpu.matmul %192, %191, %cst_96 {dimension_numbers = #tpu.dot_dimension_numbers<[1], [0], [0], [1], [0, 0, 1, 1], [], []>} : vector<8x2xf32>, vector<2x1xf32>, vector<8x1xf32> -> vector<8x1xf32>
    %c0_97 = arith.constant 0 : index
    %c0_98 = arith.constant 0 : index
    %194 = vector.load %arg27[%c0_97, %c0_98] : memref<8x1xf32, #tpu.memory_space<vmem>>, vector<8x1xf32>
    %195 = arith.addf %193, %194 : vector<8x1xf32>
    %196 = arith.negf %195 : vector<8x1xf32>
    %197 = math.exp %196 : vector<8x1xf32>
    %cst_99 = arith.constant 1.000000e+00 : f32
    %198 = vector.broadcast %cst_99 : f32 to vector<8x1xf32>
    %199 = arith.addf %198, %197 : vector<8x1xf32>
    %200 = arith.divf %198, %199 : vector<8x1xf32>
    %201 = vector.broadcast %115 : vector<16x1xf32> to vector<16x256xf32>
    %202 = arith.mulf %201, %181 : vector<16x256xf32>
    %c17_i32_100 = arith.constant 17 : i32
    %203 = tpu.dynamic_rotate %202 by %c17_i32_100 dim 1 : vector<16x256xf32>, i32 -> vector<16x256xf32>
    %204 = arith.andi %6, %10 : vector<1x256xi1>
    %cst_101 = arith.constant 0.000000e+00 : f32
    %205 = vector.shape_cast %204 : vector<1x256xi1> to vector<1x256xi1>
    %206 = vector.broadcast %205 : vector<1x256xi1> to vector<16x256xi1>
    %207 = vector.broadcast %cst_101 : f32 to vector<16x256xf32>
    %208 = arith.select %206, %203, %207 : vector<16x256xi1>, vector<16x256xf32>
    %c16_i32_102 = arith.constant 16 : i32
    %209 = tpu.dynamic_rotate %202 by %c16_i32_102 dim 1 : vector<16x256xf32>, i32 -> vector<16x256xf32>
    %cst_103 = arith.constant 0.000000e+00 : f32
    %210 = vector.shape_cast %6 : vector<1x256xi1> to vector<1x256xi1>
    %211 = vector.broadcast %210 : vector<1x256xi1> to vector<16x256xi1>
    %212 = vector.broadcast %cst_103 : f32 to vector<16x256xf32>
    %213 = arith.select %211, %209, %212 : vector<16x256xi1>, vector<16x256xf32>
    %c15_i32_104 = arith.constant 15 : i32
    %214 = tpu.dynamic_rotate %202 by %c15_i32_104 dim 1 : vector<16x256xf32>, i32 -> vector<16x256xf32>
    %215 = arith.andi %6, %12 : vector<1x256xi1>
    %cst_105 = arith.constant 0.000000e+00 : f32
    %216 = vector.shape_cast %215 : vector<1x256xi1> to vector<1x256xi1>
    %217 = vector.broadcast %216 : vector<1x256xi1> to vector<16x256xi1>
    %218 = vector.broadcast %cst_105 : f32 to vector<16x256xf32>
    %219 = arith.select %217, %214, %218 : vector<16x256xi1>, vector<16x256xf32>
    %c1_i32_106 = arith.constant 1 : i32
    %220 = tpu.dynamic_rotate %202 by %c1_i32_106 dim 1 : vector<16x256xf32>, i32 -> vector<16x256xf32>
    %cst_107 = arith.constant 0.000000e+00 : f32
    %221 = vector.shape_cast %10 : vector<1x256xi1> to vector<1x256xi1>
    %222 = vector.broadcast %221 : vector<1x256xi1> to vector<16x256xi1>
    %223 = vector.broadcast %cst_107 : f32 to vector<16x256xf32>
    %224 = arith.select %222, %220, %223 : vector<16x256xi1>, vector<16x256xf32>
    %c255_i32_108 = arith.constant 255 : i32
    %225 = tpu.dynamic_rotate %202 by %c255_i32_108 dim 1 : vector<16x256xf32>, i32 -> vector<16x256xf32>
    %cst_109 = arith.constant 0.000000e+00 : f32
    %226 = vector.shape_cast %12 : vector<1x256xi1> to vector<1x256xi1>
    %227 = vector.broadcast %226 : vector<1x256xi1> to vector<16x256xi1>
    %228 = vector.broadcast %cst_109 : f32 to vector<16x256xf32>
    %229 = arith.select %227, %225, %228 : vector<16x256xi1>, vector<16x256xf32>
    %c241_i32_110 = arith.constant 241 : i32
    %230 = tpu.dynamic_rotate %202 by %c241_i32_110 dim 1 : vector<16x256xf32>, i32 -> vector<16x256xf32>
    %231 = arith.andi %8, %10 : vector<1x256xi1>
    %cst_111 = arith.constant 0.000000e+00 : f32
    %232 = vector.shape_cast %231 : vector<1x256xi1> to vector<1x256xi1>
    %233 = vector.broadcast %232 : vector<1x256xi1> to vector<16x256xi1>
    %234 = vector.broadcast %cst_111 : f32 to vector<16x256xf32>
    %235 = arith.select %233, %230, %234 : vector<16x256xi1>, vector<16x256xf32>
    %c240_i32_112 = arith.constant 240 : i32
    %236 = tpu.dynamic_rotate %202 by %c240_i32_112 dim 1 : vector<16x256xf32>, i32 -> vector<16x256xf32>
    %cst_113 = arith.constant 0.000000e+00 : f32
    %237 = vector.shape_cast %8 : vector<1x256xi1> to vector<1x256xi1>
    %238 = vector.broadcast %237 : vector<1x256xi1> to vector<16x256xi1>
    %239 = vector.broadcast %cst_113 : f32 to vector<16x256xf32>
    %240 = arith.select %238, %236, %239 : vector<16x256xi1>, vector<16x256xf32>
    %c239_i32_114 = arith.constant 239 : i32
    %241 = tpu.dynamic_rotate %202 by %c239_i32_114 dim 1 : vector<16x256xf32>, i32 -> vector<16x256xf32>
    %242 = arith.andi %8, %12 : vector<1x256xi1>
    %cst_115 = arith.constant 0.000000e+00 : f32
    %243 = vector.shape_cast %242 : vector<1x256xi1> to vector<1x256xi1>
    %244 = vector.broadcast %243 : vector<1x256xi1> to vector<16x256xi1>
    %245 = vector.broadcast %cst_115 : f32 to vector<16x256xf32>
    %246 = arith.select %244, %241, %245 : vector<16x256xi1>, vector<16x256xf32>
    %247 = tpu.concatenate %208, %213, %219, %224, %202, %229, %235, %240, %246 in 0 : vector<16x256xf32>, vector<16x256xf32>, vector<16x256xf32>, vector<16x256xf32>, vector<16x256xf32>, vector<16x256xf32>, vector<16x256xf32>, vector<16x256xf32>, vector<16x256xf32> -> vector<144x256xf32>
    %248 = arith.truncf %247 : vector<144x256xf32> to vector<144x256xbf16>
    %c0_116 = arith.constant 0 : index
    %c0_117 = arith.constant 0 : index
    %249 = vector.load %arg22[%c0_116, %c0_117] : memref<8x144xbf16, #tpu.memory_space<vmem>>, vector<8x144xbf16>
    %cst_118 = arith.constant dense<0.000000e+00> : vector<8x256xf32>
    %250 = tpu.matmul %249, %248, %cst_118 {dimension_numbers = #tpu.dot_dimension_numbers<[1], [0], [0], [1], [0, 0, 1, 1], [], []>} : vector<8x144xbf16>, vector<144x256xbf16>, vector<8x256xf32> -> vector<8x256xf32>
    %c0_119 = arith.constant 0 : index
    %c0_120 = arith.constant 0 : index
    %251 = vector.load %arg23[%c0_119, %c0_120] : memref<8x1xf32, #tpu.memory_space<vmem>>, vector<8x1xf32>
    %252 = vector.broadcast %251 : vector<8x1xf32> to vector<8x256xf32>
    %253 = arith.addf %250, %252 : vector<8x256xf32>
    %254 = vector.broadcast %200 : vector<8x1xf32> to vector<8x256xf32>
    %255 = arith.mulf %254, %253 : vector<8x256xf32>
    %256 = arith.addf %255, %1 : vector<8x256xf32>
    %cst_121 = arith.constant 0.000000e+00 : f32
    %257 = vector.broadcast %cst_121 : f32 to vector<8x256xf32>
    %258 = arith.maximumf %256, %257 : vector<8x256xf32>
    %259 = vector.shape_cast %258 : vector<8x256xf32> to vector<1x8x256xf32>
    %c0_122 = arith.constant 0 : index
    %c0_123 = arith.constant 0 : index
    %c0_124 = arith.constant 0 : index
    %260 = vector.load %arg28[%c0_122, %c0_123, %c0_124] : memref<1x8x256xf32, #tpu.memory_space<vmem>>, vector<1x8x256xf32>
    tpu.vector_store %arg28[%c0_122, %c0_123, %c0_124], %259 {strides = array<i32>} : memref<1x8x256xf32, #tpu.memory_space<vmem>>, vector<1x8x256xf32>,
    return
  }
  func.func @transform_0(%arg0: i32) -> (i32, i32, i32) {
    %c0_i32 = arith.constant 0 : i32
    %c0_i32_0 = arith.constant 0 : i32
    %c0_i32_1 = arith.constant 0 : i32
    return %arg0, %c0_i32, %c0_i32_0 : i32, i32, i32
  }
  func.func @transform_1(%arg0: i32) -> (i32, i32) {
    %c0_i32 = arith.constant 0 : i32
    %c0_i32_0 = arith.constant 0 : i32
    %c0_i32_1 = arith.constant 0 : i32
    return %c0_i32, %c0_i32_0 : i32, i32
  }
  func.func @transform_2(%arg0: i32) -> (i32, i32) {
    %c0_i32 = arith.constant 0 : i32
    %c0_i32_0 = arith.constant 0 : i32
    %c0_i32_1 = arith.constant 0 : i32
    return %c0_i32, %c0_i32_0 : i32, i32
  }
  func.func @transform_3(%arg0: i32) -> (i32, i32) {
    %c0_i32 = arith.constant 0 : i32
    %c0_i32_0 = arith.constant 0 : i32
    %c0_i32_1 = arith.constant 0 : i32
    return %c0_i32, %c0_i32_0 : i32, i32
  }
  func.func @transform_4(%arg0: i32) -> (i32, i32) {
    %c0_i32 = arith.constant 0 : i32
    %c0_i32_0 = arith.constant 0 : i32
    %c0_i32_1 = arith.constant 0 : i32
    return %c0_i32, %c0_i32_0 : i32, i32
  }
  func.func @transform_5(%arg0: i32) -> (i32, i32) {
    %c0_i32 = arith.constant 0 : i32
    %c0_i32_0 = arith.constant 0 : i32
    %c0_i32_1 = arith.constant 0 : i32
    return %c0_i32, %c0_i32_0 : i32, i32
  }
  func.func @transform_6(%arg0: i32) -> (i32, i32) {
    %c0_i32 = arith.constant 0 : i32
    %c0_i32_0 = arith.constant 0 : i32
    %c0_i32_1 = arith.constant 0 : i32
    return %c0_i32, %c0_i32_0 : i32, i32
  }
  func.func @transform_7(%arg0: i32) -> (i32, i32) {
    %c0_i32 = arith.constant 0 : i32
    %c0_i32_0 = arith.constant 0 : i32
    %c0_i32_1 = arith.constant 0 : i32
    return %c0_i32, %c0_i32_0 : i32, i32
  }
  func.func @transform_8(%arg0: i32) -> (i32, i32) {
    %c0_i32 = arith.constant 0 : i32
    %c0_i32_0 = arith.constant 0 : i32
    %c0_i32_1 = arith.constant 0 : i32
    return %c0_i32, %c0_i32_0 : i32, i32
  }
  func.func @transform_9(%arg0: i32) -> (i32, i32) {
    %c0_i32 = arith.constant 0 : i32
    %c0_i32_0 = arith.constant 0 : i32
    %c0_i32_1 = arith.constant 0 : i32
    return %c0_i32, %c0_i32_0 : i32, i32
  }
  func.func @transform_10(%arg0: i32) -> (i32, i32) {
    %c0_i32 = arith.constant 0 : i32
    %c0_i32_0 = arith.constant 0 : i32
    %c0_i32_1 = arith.constant 0 : i32
    return %c0_i32, %c0_i32_0 : i32, i32
  }
  func.func @transform_11(%arg0: i32) -> (i32, i32) {
    %c0_i32 = arith.constant 0 : i32
    %c0_i32_0 = arith.constant 0 : i32
    %c0_i32_1 = arith.constant 0 : i32
    return %c0_i32, %c0_i32_0 : i32, i32
  }
  func.func @transform_12(%arg0: i32) -> (i32, i32) {
    %c0_i32 = arith.constant 0 : i32
    %c0_i32_0 = arith.constant 0 : i32
    %c0_i32_1 = arith.constant 0 : i32
    return %c0_i32, %c0_i32_0 : i32, i32
  }
  func.func @transform_13(%arg0: i32) -> (i32, i32) {
    %c0_i32 = arith.constant 0 : i32
    %c0_i32_0 = arith.constant 0 : i32
    %c0_i32_1 = arith.constant 0 : i32
    return %c0_i32, %c0_i32_0 : i32, i32
  }
  func.func @transform_14(%arg0: i32) -> (i32, i32) {
    %c0_i32 = arith.constant 0 : i32
    %c0_i32_0 = arith.constant 0 : i32
    %c0_i32_1 = arith.constant 0 : i32
    return %c0_i32, %c0_i32_0 : i32, i32
  }
  func.func @transform_15(%arg0: i32) -> (i32, i32) {
    %c0_i32 = arith.constant 0 : i32
    %c0_i32_0 = arith.constant 0 : i32
    %c0_i32_1 = arith.constant 0 : i32
    return %c0_i32, %c0_i32_0 : i32, i32
  }
  func.func @transform_16(%arg0: i32) -> (i32, i32) {
    %c0_i32 = arith.constant 0 : i32
    %c0_i32_0 = arith.constant 0 : i32
    %c0_i32_1 = arith.constant 0 : i32
    return %c0_i32, %c0_i32_0 : i32, i32
  }
  func.func @transform_17(%arg0: i32) -> (i32, i32) {
    %c0_i32 = arith.constant 0 : i32
    %c0_i32_0 = arith.constant 0 : i32
    %c0_i32_1 = arith.constant 0 : i32
    return %c0_i32, %c0_i32_0 : i32, i32
  }
  func.func @transform_18(%arg0: i32) -> (i32, i32) {
    %c0_i32 = arith.constant 0 : i32
    %c0_i32_0 = arith.constant 0 : i32
    %c0_i32_1 = arith.constant 0 : i32
    return %c0_i32, %c0_i32_0 : i32, i32
  }
  func.func @transform_19(%arg0: i32) -> (i32, i32) {
    %c0_i32 = arith.constant 0 : i32
    %c0_i32_0 = arith.constant 0 : i32
    %c0_i32_1 = arith.constant 0 : i32
    return %c0_i32, %c0_i32_0 : i32, i32
  }
  func.func @transform_20(%arg0: i32) -> (i32, i32) {
    %c0_i32 = arith.constant 0 : i32
    %c0_i32_0 = arith.constant 0 : i32
    %c0_i32_1 = arith.constant 0 : i32
    return %c0_i32, %c0_i32_0 : i32, i32
  }
  func.func @transform_21(%arg0: i32) -> (i32, i32) {
    %c0_i32 = arith.constant 0 : i32
    %c0_i32_0 = arith.constant 0 : i32
    %c0_i32_1 = arith.constant 0 : i32
    return %c0_i32, %c0_i32_0 : i32, i32
  }
  func.func @transform_22(%arg0: i32) -> (i32, i32) {
    %c0_i32 = arith.constant 0 : i32
    %c0_i32_0 = arith.constant 0 : i32
    %c0_i32_1 = arith.constant 0 : i32
    return %c0_i32, %c0_i32_0 : i32, i32
  }
  func.func @transform_23(%arg0: i32) -> (i32, i32) {
    %c0_i32 = arith.constant 0 : i32
    %c0_i32_0 = arith.constant 0 : i32
    %c0_i32_1 = arith.constant 0 : i32
    return %c0_i32, %c0_i32_0 : i32, i32
  }
  func.func @transform_24(%arg0: i32) -> (i32, i32) {
    %c0_i32 = arith.constant 0 : i32
    %c0_i32_0 = arith.constant 0 : i32
    %c0_i32_1 = arith.constant 0 : i32
    return %c0_i32, %c0_i32_0 : i32, i32
  }
  func.func @transform_25(%arg0: i32) -> (i32, i32) {
    %c0_i32 = arith.constant 0 : i32
    %c0_i32_0 = arith.constant 0 : i32
    %c0_i32_1 = arith.constant 0 : i32
    return %c0_i32, %c0_i32_0 : i32, i32
  }
  func.func @transform_26(%arg0: i32) -> (i32, i32) {
    %c0_i32 = arith.constant 0 : i32
    %c0_i32_0 = arith.constant 0 : i32
    %c0_i32_1 = arith.constant 0 : i32
    return %c0_i32, %c0_i32_0 : i32, i32
  }
  func.func @transform_27(%arg0: i32) -> (i32, i32, i32) {
    %c0_i32 = arith.constant 0 : i32
    %c0_i32_0 = arith.constant 0 : i32
    %c0_i32_1 = arith.constant 0 : i32
    return %arg0, %c0_i32, %c0_i32_0 : i32, i32, i32
  }
}

</mosaic_0001>

<bundles_post_ra>
// kernel: acr_block_forward.1
= control target key start
LH: loop header
LB: loop body
LE: loop exit
PB: predicated region body
PF: predicated region fallthrough
CT: control target
= control target key end

     0   :  { %s4269_s0 = inlined_call_operand.vmem [shape: f32[2,8,256], index: 0, kind: input, shape index: {}]   ;;  %s4270_s1 = inlined_call_operand.vmem [shape: bf16[16,72], index: 1, kind: input, shape index: {}]   ;;  %s4271_s2 = inlined_call_operand.vmem [shape: f32[16,1], index: 2, kind: input, shape index: {}]   ;;  %s4272_s3 = inlined_call_operand.vmem [shape: f32[16,1], index: 3, kind: input, shape index: {}]   ;;  %s4273_s4 = inlined_call_operand.vmem [shape: bf16[32,16], index: 4, kind: input, shape index: {}]   ;;  %s4274_s5 = inlined_call_operand.vmem [shape: f32[32,1], index: 5, kind: input, shape index: {}]   ;;  %s4275_s6 = inlined_call_operand.vmem [shape: f32[32,1], index: 6, kind: input, shape index: {}]   ;;  %s4276_s7 = inlined_call_operand.vmem [shape: f32[2,8], index: 7, kind: input, shape index: {}]   ;;  %s4277_s8 = inlined_call_operand.vmem [shape: f32[2,1], index: 8, kind: input, shape index: {}]   ;;  %s4278_s9 = inlined_call_operand.vmem [shape: f32[32,2], index: 9, kind: input, shape index: {}]   ;;  %s4279_s10 = inlined_call_operand.vmem [shape: f32[32,1], index: 10, kind: input, shape index: {}]   ;;  %s4280_s11 = inlined_call_operand.vmem [shape: bf16[8,288], index: 11, kind: input, shape index: {}]   ;;  %s4281_s12 = inlined_call_operand.vmem [shape: f32[8,1], index: 12, kind: input, shape index: {}]   ;;  %s4282_s13 = inlined_call_operand.vmem [shape: f32[8,1], index: 13, kind: input, shape index: {}]   ;;  %s4283_s14 = inlined_call_operand.vmem [shape: bf16[16,8], index: 14, kind: input, shape index: {}]   ;;  %s4284_s15 = inlined_call_operand.vmem [shape: f32[16,1], index: 15, kind: input, shape index: {}]   ;;  %s4285_s16 = inlined_call_operand.vmem [shape: f32[16,1], index: 16, kind: input, shape index: {}]   ;;  %s4286_s17 = inlined_call_operand.vmem [shape: f32[2,32], index: 17, kind: input, shape index: {}]   ;;  %s4287_s18 = inlined_call_operand.vmem [shape: f32[2,1], index: 18, kind: input, shape index: {}]   ;;  %s4288_s19 = inlined_call_operand.vmem [shape: f32[16,2], index: 19, kind: input, shape index: {}]   ;;  %s4289_s20 = inlined_call_operand.vmem [shape: f32[16,1], index: 20, kind: input, shape index: {}]   ;;  %s4290_s21 = inlined_call_operand.vmem [shape: bf16[8,144], index: 21, kind: input, shape index: {}]   ;;  %s4291_s22 = inlined_call_operand.vmem [shape: f32[8,1], index: 22, kind: input, shape index: {}]   ;;  %s4292_s23 = inlined_call_operand.vmem [shape: f32[2,16], index: 23, kind: input, shape index: {}]   ;;  %s4293_s24 = inlined_call_operand.vmem [shape: f32[2,1], index: 24, kind: input, shape index: {}]   ;;  %s4294_s25 = inlined_call_operand.vmem [shape: f32[8,2], index: 25, kind: input, shape index: {}]   ;;  %s4295_s26 = inlined_call_operand.vmem [shape: f32[8,1], index: 26, kind: input, shape index: {}]   ;;  %s4296_s27 = inlined_call_operand.vmem [shape: f32[2,8,256], index: 27, kind: output, shape index: {}]  }
   0x1   :  { %4349 = sst [smem:[#allocation4_spill]] %s4269_s0 }
   0x2   :  { %4350 = sst [smem:[#allocation5_spill]] %s4270_s1 }
   0x3   :  { %4351 = sst [smem:[#allocation6_spill]] %s4271_s2 }
   0x4   :  { %4352 = sst [smem:[#allocation7_spill]] %s4272_s3 }
   0x5   :  { %4353 = sst [smem:[#allocation8_spill]] %s4273_s4 }
   0x6   :  { %4354 = sst [smem:[#allocation9_spill]] %s4274_s5 }
   0x7   :  { %4355 = sst [smem:[#allocation10_spill]] %s4275_s6 }
   0x8   :  { %4356 = sst [smem:[#allocation11_spill]] %s4276_s7  ;;  %s3360_s7 = smov 0  }
   0x9   :  { %4357 = sst [smem:[#allocation12_spill]] %s4277_s8 }
   0xa   :  { %4358 = sst [smem:[#allocation13_spill]] %s4278_s9 }
   0xb   :  { %4359 = sst [smem:[#allocation14_spill]] %s4279_s10 }
   0xc   :  { %4360 = sst [smem:[#allocation15_spill]] %s4280_s11 }
   0xd   :  { %4361 = sst [smem:[#allocation16_spill]] %s4295_s26 }
   0xe   :  { %4362 = sst [smem:[#allocation17_spill]] %s4296_s27 }
   0xf LB: > { %4363 = sst [smem:[#allocation2_spill]] %s3205_s7  ;;  %s2583_s4 = sadd.s32 4294967295, %s3205_s7   ;;  %s3205_s7 = sphi %s3360_s7, %s37_s7  }
  0x10   : > { %p2587_p0 = scmp.ge.s32.totalorder %s3205_s7, 1  ;;  %p737_p1 = scmp.lt.s32.totalorder %s3205_s7, 3 }
  0x12   : > { %p738_p2 = pnand %p2587_p0, %p737_p1 }
  0x14   : > { %741 = sbr.rel (%p738_p2) target bundleno = 2207 (0x89f), region = 128 }
  0x1b   : > { %p809_p3 = scmp.lt.s32.totalorder %s2583_s4, 1  ;;  %s4365_s5 = sld [smem:[#allocation4_spill]]  ;;  %v3211_v4 = vmov 0.0   ;;  %vm4330_vm0 = vmmov 0   ;;  %v3217_v5 = vmov 0   ;;  %v822_v21 = vlaneseq  ;;  %v2114_v39 = vld [vmem:[%s4285_s16] sm:$0xff] }
  0x1c   : > { %s4318_s0 = smov 16   ;;  %s4316_s10 = smov 15   ;;  %2803 = vmatprep.subr.mxu0 %v3211_v4  ;;  %2805 = vmatprep.mubr.msk.f32.mxu0 %vm4330_vm0, %v3211_v4  ;;  %vm4324_vm2 = vcmask 64512   ;;  %vm3218_vm12 = vmmov 1  }
  0x1d   : > { %s4535_s4 = smov (!%p809_p3, %s2583_s4), 1  ;;  %s4312_s29 = smov 1   ;;  %2919 = vset.pattern.permute.xlu1 %v3217_v5  ;;  %2918 = vset.pattern.permute.xlu0 %v3217_v5  ;;  %v3439_v23 = vand.u32 127, %v822_v21 }
  0x1e   : > { %4364 = sst [smem:[#allocation3_spill]] %s4535_s4  ;;  %s4305_s8 = sshll.u32 %s4535_s4, 4 }
  0x1f   : > { %s4310_s1 = smov 127   ;;  %s4306_s6 = smov 113   ;;  %v3442_v24 = vadd.s32 128, %v3439_v23  ;;  %v825_v26 = vand.u32 15, %v3439_v23  ;;  %vm4328_vm1 = vcmp.lt.s32.totalorder %v3439_v23, 16  ;;  %vm4327_vm3 = vcmp.ge.s32.totalorder %v3439_v23, 16 }
  0x20   : > { %s4308_s11 = smov 112   ;;  %s4320_s2 = smov 17   ;;  %vm4326_vm5 = vcmp.lt.s32.totalorder %v3439_v23, 15  ;;  %vm4325_vm6 = vcmp.lt.s32.totalorder %v3439_v23, 1  ;;  %vm4329_vm7 = vcmp.lt.s32.totalorder %v3439_v23, 17  ;;  %vm4347_vm8 = vcmp.lt.s32.totalorder %v3439_v23, 127 }
  0x21   : > { %s3376_s28 = scalar_lea.vmem %s4365_s5, %s4305_s8  ;;  %s4314_s3 = smov 111   ;;  %v826_v27 = vand.u32 15, %v3442_v24  ;;  %vm3450_vm4 = vcmp.ge.s32.totalorder %v825_v26, 1  ;;  %vm3467_vm10 = vcmp.le.s32.totalorder %v825_v26, 14  ;;  %vm4332_vm0 = vcmp.lt.s32.totalorder %v3439_v23, 111 }
  0x22   : > { %v3379_v0 = vld [vmem:[%s3376_s28] sm:$0xff]  ;;  %v3382_v1 = vld [vmem:[%s3376_s28 + $0x8] sm:$0xff]  ;;  %s4366_s5 = sld [smem:[#allocation6_spill]]  ;;  %s4368_s30 = sld [smem:[#allocation9_spill]]  ;;  %vm3482_vm11 = vmand %vm4327_vm3, %vm3450_vm4 }
  0x23   : > { %v835_v2 = vadd.f32 %v3382_v1, %v3379_v0  ;;  %v2883_v3 = vpack.i.bf16 %v3382_v1, %v3379_v0  ;;  %vm3463_vm9 = vcmp.ge.s32.totalorder %v826_v27, 1  ;;  %vm3498_vm14 = vcmp.le.s32.totalorder %v826_v27, 14  ;;  %vm3514_vm15 = vmpackc.low %vm4327_vm3, %vm3482_vm11  ;;  %s4393_s8 = sld [smem:[#allocation13_spill]]  ;;  %s4396_s7 = sld [smem:[#allocation14_spill]] }
  0x24   : > { %vm3494_vm13 = vmpackc.low %vm3218_vm12, %vm3463_vm9  ;;  %s4530_s4 = sld [smem:[#allocation3_spill]] }
  0x25   : > { %836 = vadd.xlane.f32.xlu0 %v835_v2  ;;  %2884 = vrot.lane.b32.xlu1 %v2883_v3, %s4318_s0  ;;  %s4400_s0 = smov 15  }
  0x28   : > { %v1234_v6 = vld [vmem:[%s4366_s5 + $0x8] sm:$0xff]  ;;  %v1233_v7 = vld [vmem:[%s4366_s5] sm:$0xff]  ;;  %v1347_v14 = vld [vmem:[%s4368_s30 + $0x10] sm:$0xff]  ;;  %s4404_s5 = smov 112  }
  0x29   : > { %2889 = vrot.lane.b32.xlu1 %v2883_v3, %s4316_s10  ;;  %v1345_v10 = vld [vmem:[%s4368_s30] sm:$0xff]  ;;  %v1346_v11 = vld [vmem:[%s4368_s30 + $0x8] sm:$0xff]  ;;  %v1348_v15 = vld [vmem:[%s4368_s30 + $0x18] sm:$0xff]  ;;  %s4372_s10 = sld [smem:[#allocation11_spill]]  ;;  %s4397_s9 = smov %s4396_s7 }
  0x2a   : > { %s4532_s30 = sld [smem:[#allocation17_spill]] }
  0x2d   : > { %2894 = vrot.lane.b32.xlu1 %v2883_v3, %s4312_s29  ;;  %s4367_s29 = sld [smem:[#allocation7_spill]] }
  0x2f   : > { %v839_v37 = vld [vmem:[%s4372_s10] sm:$0x3]  ;;  %s4405_s10 = smov 111  }
  0x31   : > { %2899 = vrot.lane.b32.xlu1 %v2883_v3, %s4310_s1  ;;  %s4369_s1 = sld [smem:[#allocation10_spill]] }
  0x33   : > { %v1249_v8 = vld [vmem:[%s4367_s29] sm:$0xff]  ;;  %v1250_v9 = vld [vmem:[%s4367_s29 + $0x8] sm:$0xff] }
  0x35   : > { %2904 = vrot.lane.b32.xlu1 %v2883_v3, %s4306_s6  ;;  %s4403_s6 = smov 113  }
  0x37   : > { %v1377_v12 = vld [vmem:[%s4369_s1] sm:$0xff]  ;;  %v1378_v13 = vld [vmem:[%s4369_s1 + $0x8] sm:$0xff]  ;;  %v1379_v16 = vld [vmem:[%s4369_s1 + $0x10] sm:$0xff] }
  0x38   : > { %v1380_v17 = vld [vmem:[%s4369_s1 + $0x18] sm:$0xff]  ;;  %s4398_s1 = smov 17  }
  0x39   : > { %2909 = vrot.lane.b32.xlu1 %v2883_v3, %s4308_s11  ;;  %s4394_s11 = sld [smem:[#allocation12_spill]] }
  0x3b   : > { %2879 = vrot.lane.b32.xlu0 %v2883_v3, %s4320_s2  ;;  %s4391_s2 = sld [smem:[#allocation5_spill]] }
  0x3d   : > { %2914 = vrot.lane.b32.xlu1 %v2883_v3, %s4314_s3  ;;  %s4531_s3 = sshll.u32 %s4530_s4, 4 }
  0x3f   : > { %1237 = vperm.xlu0 %2918, %v1233_v7  }
  0x41   : > { %1242 = vperm.xlu1 %2919, %v1234_v6  }
  0x43   : > { %1258 = vperm.xlu0 %2918, %v1250_v9  }
  0x45   : > { %1253 = vperm.xlu1 %2919, %v1249_v8  }
  0x47   : > { %1356 = vperm.xlu0 %2918, %v1346_v11  }
  0x49   : > { %1351 = vperm.xlu1 %2919, %v1345_v10  }
  0x4b   : > { %1388 = vperm.xlu0 %2918, %v1378_v13  }
  0x4d   : > { %1383 = vperm.xlu1 %2919, %v1377_v12  }
  0x4f   : > { %1366 = vperm.xlu0 %2918, %v1348_v15  }
  0x51   : > { %1361 = vperm.xlu1 %2919, %v1347_v14  }
  0x53   : > { %1398 = vperm.xlu0 %2918, %v1380_v17  }
  0x55   : > { %1393 = vperm.xlu1 %2919, %v1379_v16  }
  0x97   : > { %v2885_v18 = vpop.permute.xlu1 %2884 }
  0x98   : > { %v2887_v28 = vunpack.i.h.bf16 %v2885_v18  ;;  %v2886_v29 = vunpack.i.l.bf16 %v2885_v18 }
  0x9a   : > { %v1070_v41 = vsel %vm4328_vm1, %v2886_v29, %v2887_v28  ;;  %v1071_v42 = vsel %vm4328_vm1, %v2887_v28, %v2886_v29  ;;  %v3160_v29 = vld [vmem:[%s4391_s2] sm:$0xff]   ;;  %s4401_s2 = smov 1  }
  0x9b   : > { %v2890_v19 = vpop.permute.xlu1 %2889 }
  0x9c   : > { %v2892_v30 = vunpack.i.h.bf16 %v2890_v19  ;;  %v2891_v33 = vunpack.i.l.bf16 %v2890_v19 }
  0x9e   : > { %v1083_v47 = vsel %vm4326_vm5, %v2891_v33, %v2892_v30  ;;  %v1084_v53 = vsel %vm4326_vm5, %v2892_v30, %v2891_v33  ;;  %vm4346_vm5 = vcmp.lt.s32.totalorder %v3439_v23, 113  ;;  %v916_v30 = vld [vmem:[%s4393_s8] sm:$0xff] }
  0x9f   : > { %v2895_v20 = vpop.permute.xlu1 %2894 }
  0xa0   : > { %v2897_v35 = vunpack.i.h.bf16 %v2895_v20  ;;  %v2896_v36 = vunpack.i.l.bf16 %v2895_v20 }
  0xa2   : > { %v1098_v48 = vsel %vm4325_vm6, %v2896_v36, %v2897_v35  ;;  %v1099_v54 = vsel %vm4325_vm6, %v2897_v35, %v2896_v36  ;;  %vm2609_vm6 = vmpackc.low %vm3463_vm9, %vm3498_vm14 }
  0xa3   : > { %v3437_v22 = vpop.permute.xlu1 %2899  ;;  %v2610_v59 = vpack.c.bf16 %v1098_v48, %v1083_v47  ;;  %v2613_v10 = vpack.c.bf16 %v1099_v54, %v1084_v53 }
  0xa4   : > { %v2902_v44 = vunpack.i.h.bf16 %v3437_v22  ;;  %v2901_v45 = vunpack.i.l.bf16 %v3437_v22 }
  0xa6   : > { %v1112_v62 = vsel %vm4347_vm8, %v2902_v44, %v2901_v45  ;;  %v1111_v11 = vsel %vm4347_vm8, %v2901_v45, %v2902_v44 }
  0xa7   : > { %v3444_v25 = vpop.permute.xlu1 %2904  ;;  %v2616_v12 = vpack.c.bf16 %v1112_v62, %v3382_v1  ;;  %v2619_v18 = vpack.c.bf16 %v1111_v11, %v3379_v0 }
  0xa8   : > { %v2907_v2 = vunpack.i.h.bf16 %v3444_v25  ;;  %v2906_v3 = vunpack.i.l.bf16 %v3444_v25 }
  0xaa   : > { %v1125_v13 = vsel %vm4346_vm5, %v2907_v2, %v2906_v3  ;;  %v1124_v19 = vsel %vm4346_vm5, %v2906_v3, %v2907_v2 }
  0xab   : > { %v3457_v38 = vpop.permute.xlu1 %2909 }
  0xac   : > { %v2912_v6 = vunpack.i.h.bf16 %v3457_v38  ;;  %v2911_v7 = vunpack.i.l.bf16 %v3457_v38  ;;  %v918_v38 = vld [vmem:[%s4393_s8 + $0x10] sm:$0xff] }
  0xaf   : > { %v2915_v58 = vpop.permute.xlu1 %2914 }
  0xb0   : > { %v2917_v8 = vunpack.i.h.bf16 %v2915_v58  ;;  %v2916_v9 = vunpack.i.l.bf16 %v2915_v58 }
  0xb2   : > { %v837_v31 = vpop.xlane.xlu0 %836  ;;  %v1152_v1 = vsel %vm4332_vm0, %v2916_v9, %v2917_v8  ;;  %v1153_v16 = vsel %vm4332_vm0, %v2917_v8, %v2916_v9  ;;  %vm2618_vm0 = vmpackc.low %vm3467_vm10, %vm3218_vm12  ;;  %v921_v9 = vld [vmem:[%s4396_s7 + $0x8] sm:$0xff]  ;;  %s4402_s7 = smov 127  }
  0xb3   : > { %v838_v34 = vmul.f32 0.00390625, %v837_v31  ;;  %v1160_v0 = vsel %vm3467_vm10, %v1152_v1, 0.0  ;;  %v840_v31 = vld [vmem:[%s4394_s11] sm:$0x3]  ;;  %s4395_s11 = sld [smem:[#allocation8_spill]]  ;;  %v923_v1 = vld [vmem:[%s4397_s9 + $0x18] sm:$0xff] }
  0xb4   : > { %v1170_v27 = vpack.c.bf16 %v1160_v0, %v1160_v0 }
  0xb5   : > { %2804 = vmatpush3.msra.mxu0 %v838_v34 }
  0xb6   : > { %2806 = vmatmul.mubr.msk.f32.vlgmr.msra.gmra.mrb[0].mxu0 %vm4324_vm2, %v839_v37  ;;  %v2880_v43 = vpop.permute.xlu0 %2879  ;;  %vm3524_vm2 = vmand %vm4327_vm3, %vm3467_vm10  ;;  %vm4333_vm3 = vcmp.lt.s32.totalorder %v3439_v23, 112  ;;  %v917_v37 = vld [vmem:[%s4393_s8 + $0x8] sm:$0xff] }
  0xb7   : > { %v2882_v49 = vunpack.i.h.bf16 %v2880_v43  ;;  %v2881_v50 = vunpack.i.l.bf16 %v2880_v43  ;;  %1222 = vmatprep.mubr.bf16.mxu0 %v3217_v5  ;;  %vm2612_vm1 = vmpackc.low %vm3450_vm4, %vm3524_vm2  ;;  %v1140_v14 = vsel %vm4333_vm3, %v2912_v6, %v2911_v7  ;;  %v1139_v20 = vsel %vm4333_vm3, %v2911_v7, %v2912_v6 }
  0xb8   : > { %v2622_v21 = vpack.c.bf16 %v1140_v14, %v1125_v13  ;;  %v2625_v25 = vpack.c.bf16 %v1139_v20, %v1124_v19  ;;  %vm4343_vm3 = vcmask 1043456  }
  0xb9   : > { %v1055_v55 = vsel %vm4329_vm7, %v2881_v50, %v2882_v49  ;;  %v1056_v56 = vsel %vm4329_vm7, %v2882_v49, %v2881_v50  ;;  %vm4334_vm7 = vcmp.lt.s32.totalorder %v3442_v24, 240  ;;  %v1185_v28 = vsel %vm4343_vm3, %v1170_v27, 0  ;;  %v3161_v7 = vld [vmem:[%s4395_s11] sm:$0xff]   ;;  %v3162_v8 = vld [vmem:[%s4395_s11 + $0x8] sm:$0xff]   ;;  %s4406_s11 = sld [smem:[#allocation15_spill]] }
  0xba   : > { %v2604_v60 = vpack.c.bf16 %v1070_v41, %v1055_v55  ;;  %v2607_v61 = vpack.c.bf16 %v1071_v42, %v1056_v56  ;;  %v919_v41 = vld [vmem:[%s4393_s8 + $0x18] sm:$0xff]  ;;  %s4399_s8 = smov 16  }
  0xbc   : > { %2605 = vmatprep.subr.msk.bf16.mxu0 %vm3494_vm13, %v2604_v60  ;;  %vm2615_vm13 = vmpackc.low %vm3498_vm14, %vm3218_vm12 }
  0xbd   : > { %2608 = vmatpush1.bf16.msk.msra.mxu0 %vm3514_vm15, %v2607_v61  ;;  %vm3562_vm15 = vmand %vm4334_vm7, %vm3498_vm14 }
  0xbe   : > { %2611 = vmatprep.subr.msk.bf16.mxu0 %vm2609_vm6, %v2610_v59  ;;  %vm3574_vm6 = vmand %vm4334_vm7, %vm3463_vm9  ;;  %v1161_v22 = vsel %vm3562_vm15, %v1153_v16, 0.0  ;;  %v1238_v43 = vpop.permute.xlu0 %1237 }
  0xbf   : > { %v1171_v26 = vpack.c.bf16 %v1161_v22, %v1161_v22 }
  0xc0   : > { %v1243_v42 = vpop.permute.xlu1 %1242 }
  0xc1   : > { %2614 = vmatpush1.bf16.msk.msra.mxu0 %vm2612_vm1, %v2613_v10  ;;  %vm2621_vm1 = vmpackc.low %vm4334_vm7, %vm3574_vm6  ;;  %vm1179_vm7 = vcmask 588800   ;;  %v920_v10 = vld [vmem:[%s4397_s9] sm:$0xff] }
  0xc2   : > { %2617 = vmatprep.subr.msk.bf16.mxu0 %vm2615_vm13, %v2616_v12  ;;  %vm2624_vm13 = vmpackc.low %vm3218_vm12, %vm3450_vm4  ;;  %vm4345_vm12 = vcmask 15360   ;;  %v1259_v51 = vpop.permute.xlu0 %1258 }
  0xc3   : > { %2810 = vmatprep.mubr.msk.f32.mxu1 %vm4345_vm12, %v916_v30 }
  0xc4   : > { %v1254_v45 = vpop.permute.xlu1 %1253 }
  0xc5   : > { %2620 = vmatpush1.bf16.msk.msra.mxu0 %vm2618_vm0, %v2619_v18  ;;  %vm4392_vm0 = vmmov 0   ;;  %v922_v18 = vld [vmem:[%s4397_s9 + $0x10] sm:$0xff] }
  0xc6   : > { %2623 = vmatprep.subr.msk.bf16.mxu0 %vm2621_vm1, %v2622_v21  ;;  %vm4344_vm1 = vcmask 1041408  }
  0xc9   : > { %2626 = vmatpush1.bf16.msk.msra.mxu0 %vm2624_vm13, %v2625_v25  ;;  %vm4407_vm13 = vcmp.lt.s32.totalorder %v3439_v23, 17 }
  0xca   : > { %2627 = vmatprep.subr.msk.bf16.mxu0 %vm4343_vm3, %v1171_v26 }
  0xcd   : > { %1199 = vmatpush1.bf16.msra.mxu0 %v1185_v28 }
  0xd0   : > { %2628 = vmatmul.mubr.msk.bf16.vlgmr.msra.gmra.mrb[4].mxu0 %vm1179_vm7, %v3160_v29  ;;  %vm4342_vm7 = vcmask 130048  }
  0xd1   : > { %2824 = vmatprep.mubr.msk.f32.mxu0 %vm4392_vm0, %v3211_v4 }
 0x189   : > { %v911_v33 = vpop.f32.mrb[0].mxu0 }
 0x18a   : > { %v912_v34 = vadd.f32 %v911_v33, %v840_v31  ;;  %v2807_v35 = vpop.f32.mrb[1].mxu0 }
 0x18c   : > { %v915_v36 = vmax.f32 %v912_v34, 0.0 }
 0x18e   : > { %2808 = vmatprep.subr.msk.mxu1 %vm4344_vm1, %v915_v36 }
 0x18f   : > { %2809 = vmatpush3.msk.msra.mxu1 %vm4344_vm1, %v915_v36  ;;  %v1352_v36 = vpop.permute.xlu1 %1351 }
 0x190   : > { %2811 = vmatmul.mubr.msk.f32.vlgmr.msra.gmra.mrb[0].mxu1 %vm4345_vm12, %v917_v37 }
 0x191   : > { %2813 = vmatprep.mubr.msk.f32.mxu1 %vm4345_vm12, %v918_v38 }
 0x194   : > { %2814 = vmatmul.mubr.msk.f32.gmra.mrb[2].mxu1 %vm4345_vm12, %v919_v41  ;;  %v1357_v41 = vpop.permute.xlu0 %1356  ;;  %vm3749_vm12 = vmpackc.low %vm3463_vm9, %vm3463_vm9  ;;  %vm4415_vm9 = vcmp.lt.s32.totalorder %v3439_v23, 16 }
 0x195   : > { %1324 = vmatprep.mubr.bf16.mxu1 %v3217_v5 }
 0x1a3   : > { %v1224_v44 = vpop.f32.mrb[4].mxu0 }
 0x1a4   : > { %v1245_v47 = vmul.f32 %v1238_v43, %v1224_v44  ;;  %v1226_v48 = vpop.f32.mrb[5].mxu0  ;;  %v1384_v44 = vpop.permute.xlu1 %1383 }
 0x1a5   : > { %v1246_v49 = vmul.f32 %v1238_v43, %v1226_v48  ;;  %v1228_v50 = vpop.f32.mrb[6].mxu0 }
 0x1a6   : > { %v1247_v53 = vmul.f32 %v1243_v42, %v1228_v50  ;;  %v1230_v54 = vpop.f32.mrb[7].mxu0  ;;  %v1261_v55 = vadd.f32 %v1254_v45, %v1245_v47 }
 0x1a7   : > { %v1248_v56 = vmul.f32 %v1243_v42, %v1230_v54  ;;  %v1262_v57 = vadd.f32 %v1254_v45, %v1246_v49  ;;  %v1389_v45 = vpop.permute.xlu0 %1388 }
 0x1a8   : > { %v1265_v58 = vmax.f32 %v1261_v55, 0.0  ;;  %v1263_v59 = vadd.f32 %v1259_v51, %v1247_v53 }
 0x1a9   : > { %v1266_v60 = vmax.f32 %v1262_v57, 0.0  ;;  %v1264_v61 = vadd.f32 %v1259_v51, %v1248_v56  ;;  %v1362_v51 = vpop.permute.xlu1 %1361 }
 0x1aa   : > { %v1267_v62 = vmax.f32 %v1263_v59, 0.0 }
 0x1ab   : > { %v1268_v2 = vmax.f32 %v1264_v61, 0.0  ;;  %v1367_v53 = vpop.permute.xlu0 %1366 }
 0x1ac   : > { %v1273_v3 = vpack.c.bf16 %v1267_v62, %v1265_v58 }
 0x1ad   : > { %v1274_v6 = vpack.c.bf16 %v1268_v2, %v1266_v60  ;;  %v1394_v57 = vpop.permute.xlu1 %1393 }
 0x1af   : > { %1292 = vmatprep.subr.bf16.mxu1 %v1274_v6  ;;  %v1399_v2 = vpop.permute.xlu0 %1398 }
 0x1b0   : > { %1293 = vmatpush1.bf16.msra.mxu1 %v1273_v3 }
 0x1b3   : > { %2631 = vmatmul.mubr.msk.bf16.vlgmr.msra.gmra.mrb[4].mxu1 %vm4342_vm7, %v3161_v7 }
 0x1b4   : > { %1334 = vmatprep.mubr.bf16.mxu1 %v3217_v5 }
 0x1bb   : > { %2632 = vmatmul.mubr.msk.bf16.gmra.mrb[8].mxu1 %vm4342_vm7, %v3162_v8  ;;  %vm4408_vm7 = vmmov %vm4407_vm13 }
 0x1bc   : > { %vm4409_vm3 = vmmov %vm4408_vm7 }
 0x1bd   : > { %vm4410_vm1 = vmmov %vm4409_vm3 }
 0x1be   : > { %vm4419_vm5 = vmmov %vm4408_vm7 }
 0x1bf   : > { %vm4420_vm8 = vmmov %vm4419_vm5 }
 0x263   : > { %v2812_v11 = vpop.f32.mrb[0].mxu1 }
 0x264   : > { %v1013_v12 = vadd.f32 %v2812_v11, %v921_v9  ;;  %v1007_v13 = vpop.f32.mrb[1].mxu1 }
 0x265   : > { %v1008_v14 = vadd.f32 %v1007_v13, %v920_v10 }
 0x266   : > { %v2599_v16 = vmul.f32 -1.442695, %v1013_v12 }
 0x267   : > { %v2598_v19 = vmul.f32 -1.442695, %v1008_v14  ;;  %v2815_v20 = vpop.f32.mrb[2].mxu1 }
 0x268   : > { %3169 = vpow2.f32 %v2599_v16  ;;  %v1023_v21 = vadd.f32 %v2815_v20, %v923_v1  ;;  %v1017_v22 = vpop.f32.mrb[3].mxu1 }
 0x269   : > { %3171 = vpow2.f32 %v2598_v19  ;;  %v1018_v0 = vadd.f32 %v1017_v22, %v922_v18  ;;  %v3219_v22 = vmov 0.0|0.0  }
 0x26a   : > { %v2601_v25 = vmul.f32 -1.442695, %v1023_v21  ;;  %2844 = vmatprep.subr.bf16.mxu0 %v3219_v22 }
 0x26b   : > { %v2600_v26 = vmul.f32 -1.442695, %v1018_v0 }
 0x26c   : > { %3173 = vpow2.f32 %v2601_v25 }
 0x26d   : > { %3175 = vpow2.f32 %v2600_v26 }
 0x272   : > { %v3170_v27 = vpop.eup %3169 }
 0x273   : > { %v3172_v28 = vpop.eup %3171  ;;  %v1039_v29 = vadd.f32 1.0, %v3170_v27 }
 0x274   : > { %v1038_v30 = vadd.f32 1.0, %v3172_v28 }
 0x275   : > { %3177 = vrcp.f32 %v1039_v29 }
 0x276   : > { %v3174_v31 = vpop.eup %3173  ;;  %3179 = vrcp.f32 %v1038_v30 }
 0x277   : > { %v3176_v33 = vpop.eup %3175  ;;  %v1041_v34 = vadd.f32 1.0, %v3174_v31 }
 0x278   : > { %v1040_v35 = vadd.f32 1.0, %v3176_v33 }
 0x279   : > { %3181 = vrcp.f32 %v1041_v34 }
 0x27a   : > { %3183 = vrcp.f32 %v1040_v35 }
 0x27f   : > { %v3178_v37 = vpop.eup %3177 }
 0x280   : > { %v3180_v38 = vpop.eup %3179  ;;  %1609 = vperm.xlu0 %2918, %v3178_v37  }
 0x281   : > { %1604 = vperm.xlu1 %2919, %v3180_v38  }
 0x283   : > { %v3182_v42 = vpop.eup %3181 }
 0x284   : > { %v3184_v43 = vpop.eup %3183  ;;  %1619 = vperm.xlu0 %2918, %v3182_v42  }
 0x285   : > { %1614 = vperm.xlu1 %2919, %v3184_v43  }
 0x286   : > { %v1326_v47 = vpop.f32.mrb[4].mxu1 }
 0x287   : > { %v1328_v48 = vpop.f32.mrb[5].mxu1  ;;  %v1369_v1 = vmul.f32 %v1352_v36, %v1326_v47 }
 0x288   : > { %v1330_v49 = vpop.f32.mrb[6].mxu1  ;;  %v1370_v16 = vmul.f32 %v1352_v36, %v1328_v48 }
 0x289   : > { %v1332_v50 = vpop.f32.mrb[7].mxu1  ;;  %v1371_v11 = vmul.f32 %v1357_v41, %v1330_v49  ;;  %v1401_v19 = vadd.f32 %v1384_v44, %v1369_v1 }
 0x28a   : > { %v1372_v12 = vmul.f32 %v1357_v41, %v1332_v50  ;;  %v1402_v20 = vadd.f32 %v1384_v44, %v1370_v16 }
 0x28b   : > { %v1403_v13 = vadd.f32 %v1389_v45, %v1371_v11 }
 0x28c   : > { %v1404_v14 = vadd.f32 %v1389_v45, %v1372_v12  ;;  %v1409_v21 = vadd.f32 %v1402_v20, %v1401_v19 }
 0x28e   : > { %v1336_v54 = vpop.f32.mrb[8].mxu1  ;;  %v1412_v18 = vadd.f32 %v1404_v14, %v1403_v13 }
 0x28f   : > { %v1373_v55 = vmul.f32 %v1362_v51, %v1336_v54  ;;  %v1338_v56 = vpop.f32.mrb[9].mxu1  ;;  %v3722_v54 = vld [vmem:[%s4406_s11] sm:$0xff] }
 0x290   : > { %v1374_v58 = vmul.f32 %v1362_v51, %v1338_v56  ;;  %v1340_v59 = vpop.f32.mrb[10].mxu1  ;;  %v2027_v56 = vld [vmem:[%s4282_s13] sm:$0xff] }
 0x291   : > { %v1405_v60 = vadd.f32 %v1394_v57, %v1373_v55  ;;  %v1375_v61 = vmul.f32 %v1367_v53, %v1340_v59  ;;  %v1342_v62 = vpop.f32.mrb[11].mxu1  ;;  %v2019_v55 = vld [vmem:[%s4281_s12] sm:$0xff] }
 0x292   : > { %v1406_v3 = vadd.f32 %v1394_v57, %v1374_v58  ;;  %v1376_v6 = vmul.f32 %v1367_v53, %v1342_v62  ;;  %v2640_v57 = vcombine.high %v3722_v54, %v3722_v54 }
 0x293   : > { %v1407_v7 = vadd.f32 %v1399_v2, %v1375_v61 }
 0x294   : > { %v1408_v8 = vadd.f32 %v1399_v2, %v1376_v6  ;;  %v3647_v9 = vadd.f32 %v1406_v3, %v1405_v60  ;;  %1969 = vmatprep.mubr.bf16.mxu1 %v2640_v57  ;;  %v2099_v6 = vld [vmem:[%s4284_s15 + $0x8] sm:$0xff] }
 0x296   : > { %v3649_v10 = vadd.f32 %v1408_v8, %v1407_v7 }
 0x2a3   : > { %1413 = vadd.xlane.f32.xlu0 %v1412_v18  ;;  %v2115_v18 = vld [vmem:[%s4285_s16 + $0x8] sm:$0xff] }
 0x2a9   : > { %1410 = vadd.xlane.f32.xlu1 %v1409_v21 }
 0x2ff   : > { %v1610_v0 = vpop.permute.xlu0 %1609 }
 0x300   : > { %v3652_v25 = vmul.f32 %v1610_v0, %v1403_v13  ;;  %v3654_v26 = vmul.f32 %v1610_v0, %v1404_v14  ;;  %v1605_v27 = vpop.permute.xlu1 %1604 }
 0x301   : > { %v3656_v28 = vmul.f32 %v1605_v27, %v1401_v19  ;;  %v3658_v29 = vmul.f32 %v1605_v27, %v1402_v20 }
 0x303   : > { %v1620_v30 = vpop.permute.xlu0 %1619  ;;  %v2920_v31 = vpack.i.bf16 %v3652_v25, %v3656_v28  ;;  %v2925_v33 = vpack.i.bf16 %v3654_v26, %v3658_v29  ;;  %v1903_v43 = vpack.c.bf16 %v3654_v26, %v3658_v29  ;;  %v1902_v44 = vpack.c.bf16 %v3652_v25, %v3656_v28 }
 0x304   : > { %v3664_v34 = vmul.f32 %v1620_v30, %v1407_v7  ;;  %v3666_v35 = vmul.f32 %v1620_v30, %v1408_v8  ;;  %v1615_v36 = vpop.permute.xlu1 %1614 }
 0x305   : > { %v3668_v37 = vmul.f32 %v1615_v36, %v1405_v60  ;;  %v3670_v38 = vmul.f32 %v1615_v36, %v1406_v3  ;;  %2921 = vrot.lane.b32.xlu1 %v2920_v31, %s4398_s1  ;;  %2926 = vrot.lane.b32.xlu0 %v2925_v33, %s4398_s1  ;;  %v2098_v60 = vld [vmem:[%s4284_s15] sm:$0xff] }
 0x307   : > { %v2990_v41 = vpack.i.bf16 %v3664_v34, %v3668_v37  ;;  %v2995_v42 = vpack.i.bf16 %v3666_v35, %v3670_v38  ;;  %v1905_v45 = vpack.c.bf16 %v3666_v35, %v3670_v38  ;;  %v1904_v47 = vpack.c.bf16 %v3664_v34, %v3668_v37 }
 0x309   : > { %2931 = vrot.lane.b32.xlu1 %v2920_v31, %s4399_s8  ;;  %2936 = vrot.lane.b32.xlu0 %v2925_v33, %s4399_s8 }
 0x30d   : > { %2941 = vrot.lane.b32.xlu1 %v2920_v31, %s4400_s0  ;;  %2946 = vrot.lane.b32.xlu0 %v2925_v33, %s4400_s0 }
 0x311   : > { %2951 = vrot.lane.b32.xlu1 %v2920_v31, %s4401_s2  ;;  %2956 = vrot.lane.b32.xlu0 %v2925_v33, %s4401_s2 }
 0x315   : > { %2961 = vrot.lane.b32.xlu1 %v2920_v31, %s4402_s7  ;;  %2966 = vrot.lane.b32.xlu0 %v2925_v33, %s4402_s7 }
 0x319   : > { %2971 = vrot.lane.b32.xlu1 %v2920_v31, %s4403_s6  ;;  %2976 = vrot.lane.b32.xlu0 %v2925_v33, %s4403_s6 }
 0x31d   : > { %2981 = vrot.lane.b32.xlu1 %v2920_v31, %s4404_s5  ;;  %2986 = vrot.lane.b32.xlu0 %v2925_v33, %s4404_s5 }
 0x321   : > { %2991 = vrot.lane.b32.xlu1 %v2990_v41, %s4398_s1  ;;  %2996 = vrot.lane.b32.xlu0 %v2995_v42, %s4398_s1 }
 0x325   : > { %3001 = vrot.lane.b32.xlu1 %v2990_v41, %s4399_s8  ;;  %3006 = vrot.lane.b32.xlu0 %v2995_v42, %s4399_s8 }
 0x329   : > { %3011 = vrot.lane.b32.xlu1 %v2990_v41, %s4400_s0  ;;  %3016 = vrot.lane.b32.xlu0 %v2995_v42, %s4400_s0 }
 0x32d   : > { %3021 = vrot.lane.b32.xlu1 %v2990_v41, %s4401_s2  ;;  %3026 = vrot.lane.b32.xlu0 %v2995_v42, %s4401_s2 }
 0x330   : > { %v1414_v48 = vpop.xlane.xlu0 %1413 }
 0x331   : > { %3031 = vrot.lane.b32.xlu1 %v2990_v41, %s4402_s7  ;;  %3036 = vrot.lane.b32.xlu0 %v2995_v42, %s4402_s7  ;;  %v1422_v50 = vmul.f32 0.00390625, %v1414_v48 }
 0x335   : > { %3041 = vrot.lane.b32.xlu1 %v2990_v41, %s4403_s6  ;;  %3046 = vrot.lane.b32.xlu0 %v2995_v42, %s4403_s6 }
 0x336   : > { %v1411_v49 = vpop.xlane.xlu1 %1410 }
 0x337   : > { %v1421_v51 = vmul.f32 0.00390625, %v1411_v49 }
 0x339   : > { %v2845_v53 = vpack.c.bf16 %v1422_v50, %v1421_v51  ;;  %3056 = vrot.lane.b32.xlu1 %v2995_v42, %s4404_s5  ;;  %3051 = vrot.lane.b32.xlu0 %v2990_v41, %s4404_s5 }
 0x33b   : > { %2846 = vmatpush3.bf16.msra.mxu0 %v2845_v53 }
 0x33c   : > { %2847 = vmatprep.subr.bf16.mxu0 %v3219_v22 }
 0x358   : > { %1419 = vadd.xlane.f32.xlu0 %v3649_v10 }
 0x35d   : > { %1416 = vadd.xlane.f32.xlu1 %v3647_v9 }
 0x36e   : > { %3066 = vrot.lane.b32.xlu1 %v2925_v33, %s4405_s10  ;;  %3061 = vrot.lane.b32.xlu0 %v2920_v31, %s4405_s10 }
 0x372   : > { %3071 = vrot.lane.b32.xlu1 %v2990_v41, %s4405_s10  ;;  %3076 = vrot.lane.b32.xlu0 %v2995_v42, %s4405_s10 }
 0x376   : > { %2022 = vperm.xlu1 %2919, %v2019_v55   ;;  %2030 = vperm.xlu0 %2918, %v2027_v56  }
 0x377   : > { %v2922_v58 = vpop.permute.xlu1 %2921  ;;  %v2927_v59 = vpop.permute.xlu0 %2926 }
 0x378   : > { %v2924_v61 = vunpack.i.h.bf16 %v2922_v58  ;;  %v2923_v62 = vunpack.i.l.bf16 %v2922_v58  ;;  %v2929_v2 = vunpack.i.h.bf16 %v2927_v59  ;;  %v2928_v3 = vunpack.i.l.bf16 %v2927_v59 }
 0x37a   : > { %v1647_v7 = vsel %vm4407_vm13, %v2924_v61, %v2929_v2  ;;  %v1651_v8 = vsel %vm4408_vm7, %v2929_v2, %v2924_v61  ;;  %v1646_v9 = vsel %vm4409_vm3, %v2923_v62, %v2928_v3  ;;  %v1650_v10 = vsel %vm4410_vm1, %v2928_v3, %v2923_v62  ;;  %2102 = vperm.xlu1 %2919, %v2098_v60   ;;  %vm3756_vm3 = vmpackc.low %vm3482_vm11, %vm3482_vm11 }
 0x37b   : > { %v2643_v12 = vpack.c.bf16 %v1647_v7, %v1646_v9  ;;  %v2646_v13 = vpack.c.bf16 %v1651_v8, %v1650_v10  ;;  %2107 = vperm.xlu0 %2918, %v2099_v6   ;;  %v2932_v14 = vpop.permute.xlu1 %2931  ;;  %v2937_v1 = vpop.permute.xlu0 %2936  ;;  %vm4416_vm11 = vmmov %vm4415_vm9 }
 0x37c   : > { %v2934_v41 = vunpack.i.h.bf16 %v2932_v14  ;;  %v2933_v42 = vunpack.i.l.bf16 %v2932_v14  ;;  %v2939_v48 = vunpack.i.h.bf16 %v2937_v1  ;;  %v2938_v49 = vunpack.i.l.bf16 %v2937_v1  ;;  %vm4417_vm1 = vmmov %vm4415_vm9 }
 0x37d   : > { %2644 = vmatprep.subr.msk.bf16.mxu1 %vm3749_vm12, %v2643_v12  ;;  %vm4418_vm13 = vmmov %vm4408_vm7 }
 0x37e   : > { %2647 = vmatpush1.bf16.msk.msra.mxu1 %vm3756_vm3, %v2646_v13  ;;  %2118 = vperm.xlu1 %2919, %v2114_v39   ;;  %v1683_v58 = vsel %vm4415_vm9, %v2939_v48, %v2934_v41  ;;  %v1678_v59 = vsel %vm4416_vm11, %v2933_v42, %v2938_v49  ;;  %v1679_v60 = vsel %vm4417_vm1, %v2934_v41, %v2939_v48  ;;  %vm4421_vm9 = vmmov %vm4417_vm1  ;;  %vm4424_vm11 = vcmp.ge.s32.totalorder %v3439_v23, 16 }
 0x37f   : > { %2123 = vperm.xlu0 %2918, %v2115_v18   ;;  %v3770_v46 = vpop.permute.xlu1 %2941  ;;  %v3772_v19 = vpop.permute.xlu0 %2946  ;;  %v1682_v18 = vsel %vm4421_vm9, %v2938_v49, %v2933_v42 }
 0x380   : > { %v2944_v6 = vunpack.i.h.bf16 %v3770_v46  ;;  %v2949_v7 = vunpack.i.h.bf16 %v3772_v19  ;;  %v2943_v41 = vunpack.i.l.bf16 %v3770_v46  ;;  %v2948_v48 = vunpack.i.l.bf16 %v3772_v19 }
 0x381   : > { %v2655_v19 = vpack.c.bf16 %v1683_v58, %v1682_v18 }
 0x383   : > { %v3774_v20 = vpop.permute.xlu1 %2951  ;;  %v3776_v21 = vpop.permute.xlu0 %2956 }
 0x387   : > { %v3778_v0 = vpop.permute.xlu1 %2961  ;;  %v3780_v27 = vpop.permute.xlu0 %2966 }
 0x38b   : > { %v3782_v30 = vpop.permute.xlu1 %2971  ;;  %v3784_v31 = vpop.permute.xlu0 %2976 }
 0x38c   : > { %v2974_v29 = vunpack.i.h.bf16 %v3782_v30  ;;  %v2978_v25 = vunpack.i.l.bf16 %v3784_v31 }
 0x38f   : > { %v3786_v33 = vpop.permute.xlu1 %2981  ;;  %v3788_v36 = vpop.permute.xlu0 %2986 }
 0x393   : > { %v2992_v50 = vpop.permute.xlu1 %2991  ;;  %v2997_v51 = vpop.permute.xlu0 %2996 }
 0x394   : > { %v2994_v53 = vunpack.i.h.bf16 %v2992_v50  ;;  %v2993_v55 = vunpack.i.l.bf16 %v2992_v50  ;;  %v2999_v56 = vunpack.i.h.bf16 %v2997_v51  ;;  %v2998_v57 = vunpack.i.l.bf16 %v2997_v51 }
 0x395   : > { %v1891_v50 = vpack.c.bf16 %v1679_v60, %v1678_v59 }
 0x396   : > { %v1649_v61 = vsel %vm4408_vm7, %v2994_v53, %v2999_v56  ;;  %v1653_v62 = vsel %vm4418_vm13, %v2999_v56, %v2994_v53  ;;  %v1648_v2 = vsel %vm4419_vm5, %v2993_v55, %v2998_v57  ;;  %v1652_v3 = vsel %vm4420_vm8, %v2998_v57, %v2993_v55  ;;  %vm4422_vm5 = vmmov %vm4417_vm1 }
 0x397   : > { %v2649_v8 = vpack.c.bf16 %v1649_v61, %v1648_v2  ;;  %v2652_v9 = vpack.c.bf16 %v1653_v62, %v1652_v3  ;;  %v3002_v10 = vpop.permute.xlu1 %3001  ;;  %v3007_v12 = vpop.permute.xlu0 %3006  ;;  %vm4423_vm8 = vmmov %vm4417_vm1  ;;  %vm4427_vm7 = vcmp.lt.s32.totalorder %v3439_v23, 15 }
 0x398   : > { %v3004_v13 = vunpack.i.h.bf16 %v3002_v10  ;;  %v3003_v14 = vunpack.i.l.bf16 %v3002_v10  ;;  %v3009_v1 = vunpack.i.h.bf16 %v3007_v12  ;;  %v3008_v39 = vunpack.i.l.bf16 %v3007_v12  ;;  %vm3821_vm1 = vmpackc.low %vm4424_vm11, %vm4424_vm11 }
 0x399   : > { %2650 = vmatprep.subr.msk.bf16.mxu1 %vm3749_vm12, %v2649_v8  ;;  %v1711_v42 = vsel %vm4427_vm7, %v2944_v6, %v2949_v7  ;;  %vm4428_vm13 = vmmov %vm4427_vm7  ;;  %v2954_v8 = vunpack.i.h.bf16 %v3774_v20 }
 0x39a   : > { %2653 = vmatpush1.bf16.msk.msra.mxu1 %vm3756_vm3, %v2652_v9  ;;  %v1680_v51 = vsel %vm4422_vm5, %v3003_v14, %v3008_v39  ;;  %v1681_v53 = vsel %vm4423_vm8, %v3004_v13, %v3009_v1  ;;  %v1710_v49 = vsel %vm4428_vm13, %v2943_v41, %v2948_v48  ;;  %vm4429_vm9 = vmmov %vm4422_vm5  ;;  %v1684_v59 = vsel %vm4422_vm5, %v3008_v39, %v3003_v14 }
 0x39b   : > { %v3012_v55 = vpop.permute.xlu1 %3011  ;;  %v3017_v56 = vpop.permute.xlu0 %3016  ;;  %1941 = vmatprep.subr.bf16.mxu1 %v1891_v50  ;;  %v1685_v57 = vsel %vm4429_vm9, %v3009_v1, %v3004_v13  ;;  %v1893_v60 = vpack.c.bf16 %v1681_v53, %v1680_v51  ;;  %vm4430_vm8 = vmmov %vm4427_vm7  ;;  %v2959_v9 = vunpack.i.h.bf16 %v3776_v21  ;;  %v1714_v13 = vsel %vm4427_vm7, %v2948_v48, %v2943_v41 }
 0x39c   : > { %v3014_v61 = vunpack.i.h.bf16 %v3012_v55  ;;  %v3013_v62 = vunpack.i.l.bf16 %v3012_v55  ;;  %v3019_v2 = vunpack.i.h.bf16 %v3017_v56  ;;  %v3018_v3 = vunpack.i.l.bf16 %v3017_v56  ;;  %vm3842_vm11 = vmpackc.low %vm3498_vm14, %vm3498_vm14 }
 0x39d   : > { %v1715_v58 = vsel %vm4430_vm8, %v2949_v7, %v2944_v6  ;;  %v2658_v10 = vpack.c.bf16 %v1685_v57, %v1684_v59  ;;  %v2661_v14 = vpack.c.bf16 %v1711_v42, %v1710_v49  ;;  %v2953_v1 = vunpack.i.l.bf16 %v3774_v20  ;;  %vm4433_vm13 = vmmov %vm4427_vm7 }
 0x39e   : > { %2656 = vmatpush1.bf16.msk.msra.mxu1 %vm3821_vm1, %v2655_v19  ;;  %v2958_v6 = vunpack.i.l.bf16 %v3776_v21  ;;  %v1713_v7 = vsel %vm4433_vm13, %v3014_v61, %v3019_v2  ;;  %vm4434_vm9 = vmmov %vm4427_vm7  ;;  %v2664_v21 = vpack.c.bf16 %v1715_v58, %v1714_v13  ;;  %vm4437_vm5 = vcmp.lt.s32.totalorder %v3439_v23, 1 }
 0x39f   : > { %1943 = vmatprep.subr.bf16.mxu1 %v1893_v60  ;;  %v1712_v39 = vsel %vm4434_vm9, %v3013_v62, %v3018_v3  ;;  %v3022_v52 = vpop.permute.xlu1 %3021  ;;  %v3027_v18 = vpop.permute.xlu0 %3026  ;;  %vm3861_vm14 = vmpackc.low %vm3524_vm2, %vm3524_vm2  ;;  %v1743_v41 = vsel %vm4437_vm5, %v2954_v8, %v2959_v9  ;;  %v1717_v50 = vsel %vm4427_vm7, %v3019_v2, %v3014_v61  ;;  %v2969_v13 = vunpack.i.h.bf16 %v3780_v27 }
 0x3a0   : > { %vm4438_vm8 = vmmov %vm4437_vm5  ;;  %v2667_v53 = vpack.c.bf16 %v1713_v7, %v1712_v39  ;;  %v3024_v63 = vunpack.i.h.bf16 %v3022_v52  ;;  %v3023_v55 = vunpack.i.l.bf16 %v3022_v52  ;;  %v3029_v56 = vunpack.i.h.bf16 %v3027_v18 }
 0x3a1   : > { %v1742_v48 = vsel %vm4438_vm8, %v2953_v1, %v2958_v6  ;;  %vm4439_vm13 = vmmov %vm4427_vm7  ;;  %v3028_v19 = vunpack.i.l.bf16 %v3027_v18 }
 0x3a2   : > { %2659 = vmatpush1.bf16.msk.msra.mxu1 %vm3821_vm1, %v2658_v10  ;;  %v1716_v51 = vsel %vm4439_vm13, %v3018_v3, %v3013_v62  ;;  %vm4440_vm2 = vmmov %vm4437_vm5  ;;  %v2673_v59 = vpack.c.bf16 %v1743_v41, %v1742_v48  ;;  %v2963_v10 = vunpack.i.l.bf16 %v3778_v0  ;;  %v2973_v48 = vunpack.i.l.bf16 %v3782_v30 }
 0x3a3   : > { %2662 = vmatprep.subr.msk.bf16.mxu1 %vm3842_vm11, %v2661_v14  ;;  %v2670_v42 = vpack.c.bf16 %v1717_v50, %v1716_v51  ;;  %v1747_v49 = vsel %vm4440_vm2, %v2959_v9, %v2954_v8  ;;  %vm4441_vm9 = vmmov %vm4440_vm2  ;;  %v1748_v58 = vsel %vm4440_vm2, %v3028_v19, %v3023_v55  ;;  %v2964_v9 = vunpack.i.h.bf16 %v3778_v0 }
 0x3a4   : > { %v1746_v57 = vsel %vm4441_vm9, %v2958_v6, %v2953_v1  ;;  %vm4442_vm5 = vmmov %vm4440_vm2  ;;  %v2968_v14 = vunpack.i.l.bf16 %v3780_v27  ;;  %v3032_v1 = vpop.permute.xlu1 %3031  ;;  %v3037_v6 = vpop.permute.xlu0 %3036 }
 0x3a5   : > { %v1745_v60 = vsel %vm4442_vm5, %v3024_v63, %v3029_v56  ;;  %vm4443_vm8 = vmmov %vm4440_vm2  ;;  %v2676_v2 = vpack.c.bf16 %v1747_v49, %v1746_v57  ;;  %v3034_v0 = vunpack.i.h.bf16 %v3032_v1  ;;  %v3033_v52 = vunpack.i.l.bf16 %v3032_v1 }
 0x3a6   : > { %2665 = vmatpush1.bf16.msk.msra.mxu1 %vm3861_vm14, %v2664_v21  ;;  %v1744_v61 = vsel %vm4443_vm8, %v3023_v55, %v3028_v19  ;;  %vm3892_vm7 = vmpackc.low %vm3450_vm4, %vm3450_vm4  ;;  %vm4447_vm4 = vcmp.lt.s32.totalorder %v3439_v23, 127  ;;  %v3039_v18 = vunpack.i.h.bf16 %v3037_v6  ;;  %v3038_v21 = vunpack.i.l.bf16 %v3037_v6 }
 0x3a7   : > { %2668 = vmatprep.subr.msk.bf16.mxu1 %vm3842_vm11, %v2667_v53  ;;  %vm4446_vm13 = vmmov %vm4440_vm2  ;;  %v2679_v8 = vpack.c.bf16 %v1745_v60, %v1744_v61  ;;  %v1779_v7 = vsel %vm4447_vm4, %v2969_v13, %v2964_v9  ;;  %v2989_v19 = vunpack.i.h.bf16 %v3788_v36  ;;  %v2983_v60 = vunpack.i.l.bf16 %v3786_v33 }
 0x3a8   : > { %v1749_v3 = vsel %vm4446_vm13, %v3029_v56, %v3024_v63  ;;  %vm4448_vm9 = vmmov %vm4447_vm4  ;;  %v3042_v38 = vpop.permute.xlu1 %3041  ;;  %v2984_v56 = vunpack.i.h.bf16 %v3786_v33  ;;  %v2988_v61 = vunpack.i.l.bf16 %v3788_v36 }
 0x3a9   : > { %v2682_v32 = vpack.c.bf16 %v1749_v3, %v1748_v58  ;;  %v1778_v39 = vsel %vm4448_vm9, %v2968_v14, %v2963_v10  ;;  %vm4449_vm5 = vmmov %vm4447_vm4  ;;  %vm4455_vm9 = vcmp.lt.s32.totalorder %v3439_v23, 113  ;;  %v3044_v40 = vunpack.i.h.bf16 %v3042_v38 }
 0x3aa   : > { %2671 = vmatpush1.bf16.msk.msra.mxu1 %vm3861_vm14, %v2670_v42  ;;  %v1775_v26 = vsel %vm4449_vm5, %v2964_v9, %v2969_v13  ;;  %vm4450_vm8 = vmmov %vm4447_vm4  ;;  %v2685_v41 = vpack.c.bf16 %v1779_v7, %v1778_v39  ;;  %v3043_v51 = vunpack.i.l.bf16 %v3042_v38  ;;  %v4469_v39 = vmov 0 }
 0x3ab   : > { %2674 = vmatprep.subr.msk.bf16.mxu1 %vm3749_vm12, %v2673_v59  ;;  %v1774_v27 = vsel %vm4450_vm8, %v2963_v10, %v2968_v14  ;;  %vm4451_vm13 = vmmov %vm4447_vm4 }
 0x3ac   : > { %v1781_v28 = vsel %vm4451_vm13, %v3039_v18, %v3034_v0  ;;  %vm4452_vm2 = vmmov %vm4447_vm4  ;;  %v2688_v30 = vpack.c.bf16 %v1775_v26, %v1774_v27  ;;  %v3057_v17 = vpop.permute.xlu1 %3056 }
 0x3ad   : > { %v1780_v35 = vsel %vm4452_vm2, %v3038_v21, %v3033_v52  ;;  %vm3943_vm4 = vmpackc.low %vm3467_vm10, %vm3467_vm10  ;;  %v3059_v13 = vunpack.i.h.bf16 %v3057_v17  ;;  %v3058_v14 = vunpack.i.l.bf16 %v3057_v17 }
 0x3ae   : > { %2677 = vmatpush1.bf16.msk.msra.mxu1 %vm3892_vm7, %v2676_v2  ;;  %vm4456_vm5 = vmmov %vm4455_vm9  ;;  %v2691_v50 = vpack.c.bf16 %v1781_v28, %v1780_v35 }
 0x3af   : > { %2680 = vmatprep.subr.msk.bf16.mxu1 %vm3749_vm12, %v2679_v8  ;;  %v1810_v34 = vsel %vm4456_vm5, %v2978_v25, %v2973_v48  ;;  %vm4457_vm8 = vmmov %vm4452_vm2 }
 0x3b0   : > { %v1777_v37 = vsel %vm4457_vm8, %v3034_v0, %v3039_v18  ;;  %vm4458_vm13 = vmmov %vm4452_vm2 }
 0x3b1   : > { %vm4459_vm10 = vmmov %vm4456_vm5 }
 0x3b2   : > { %2683 = vmatpush1.bf16.msk.msra.mxu1 %vm3892_vm7, %v2682_v32  ;;  %vm3966_vm2 = vmpackc.low %vm3574_vm6, %vm3574_vm6  ;;  %vm4464_vm6 = vcmp.lt.s32.totalorder %v3439_v23, 112 }
 0x3b3   : > { %1953 = vmatprep.subr.bf16.mxu1 %v1903_v43  ;;  %v2979_v43 = vunpack.i.h.bf16 %v3784_v31  ;;  %vm4463_vm8 = vmmov %vm4456_vm5  ;;  %v1843_v33 = vsel %vm4464_vm6, %v2989_v19, %v2984_v56  ;;  %v1839_v0 = vsel %vm4464_vm6, %v2984_v56, %v2989_v19 }
 0x3b5   : > { %v1811_v31 = vsel %vm4455_vm9, %v2979_v43, %v2974_v29  ;;  %v1807_v55 = vsel %vm4459_vm10, %v2974_v29, %v2979_v43  ;;  %vm4462_vm9 = vmmov %vm4456_vm5 }
 0x3b6   : > { %1954 = vmatpush1.bf16.msra.mxu1 %v1902_v44  ;;  %v3047_v44 = vpop.permute.xlu0 %3046  ;;  %v1806_v57 = vsel %vm4462_vm9, %v2973_v48, %v2978_v25  ;;  %v2697_v59 = vpack.c.bf16 %v1811_v31, %v1810_v34  ;;  %vm4466_vm10 = vmmov %vm4456_vm5  ;;  %v2639_v48 = vcombine.low %v3722_v54, %v3722_v54  ;;  %v1425_v54 = vld [vmem:[%s4286_s17] sm:$0x3] }
 0x3b7   : > { %1955 = vmatprep.subr.bf16.mxu1 %v1905_v45  ;;  %v3049_v53 = vunpack.i.h.bf16 %v3047_v44  ;;  %v3048_v63 = vunpack.i.l.bf16 %v3047_v44  ;;  %v2700_v8 = vpack.c.bf16 %v1807_v55, %v1806_v57  ;;  %vm4467_vm9 = vmmov %vm4456_vm5 }
 0x3b9   : > { %v1813_v2 = vsel %vm4456_vm5, %v3049_v53, %v3044_v40  ;;  %v1812_v3 = vsel %vm4463_vm8, %v3048_v63, %v3043_v51  ;;  %v1809_v32 = vsel %vm4466_vm10, %v3044_v40, %v3049_v53  ;;  %v1808_v9 = vsel %vm4467_vm9, %v3043_v51, %v3048_v63  ;;  %vm4472_vm10 = vmmov %vm4464_vm6 }
 0x3ba   : > { %1956 = vmatpush1.bf16.msra.mxu1 %v1904_v47  ;;  %v1776_v47 = vsel %vm4458_vm13, %v3033_v52, %v3038_v21  ;;  %v3052_v58 = vpop.permute.xlu0 %3051  ;;  %vm4465_vm13 = vmmov %vm4464_vm6  ;;  %v2703_v10 = vpack.c.bf16 %v1813_v2, %v1812_v3  ;;  %v2706_v7 = vpack.c.bf16 %v1809_v32, %v1808_v9  ;;  %vm4468_vm5 = vcmp.lt.s32.totalorder %v3442_v24, 240  ;;  %v1502_v32 = vld [vmem:[%s4288_s19] sm:$0xff] }
 0x3bb   : > { %2686 = vmatprep.subr.msk.bf16.mxu1 %vm3842_vm11, %v2685_v41  ;;  %v2694_v42 = vpack.c.bf16 %v1777_v37, %v1776_v47  ;;  %v1842_v36 = vsel %vm4465_vm13, %v2988_v61, %v2983_v60  ;;  %v3054_v1 = vunpack.i.h.bf16 %v3052_v58  ;;  %v3053_v6 = vunpack.i.l.bf16 %v3052_v58  ;;  %vm3997_vm8 = vmpackc.low %vm4468_vm5, %vm4468_vm5  ;;  %v1426_v9 = vld [vmem:[%s4287_s18] sm:$0x3] }
 0x3bc   : > { %v4470_v39 = vsel %vm3997_vm8, 4294967295, %v4469_v39  ;;  %vm4471_vm13 = vmmov %vm4464_vm6  ;;  %v2709_v18 = vpack.c.bf16 %v1843_v33, %v1842_v36  ;;  %v3165_v36 = vld [vmem:[%s4406_s11 + $0x8] ss:$0 sps:$4 sm:$0xff]  }
 0x3bd   : > { %v1838_v52 = vsel %vm4471_vm13, %v2983_v60, %v2988_v61  ;;  %v1845_v21 = vsel %vm4472_vm10, %v3059_v13, %v3054_v1  ;;  %vm4473_vm9 = vmmov %vm4464_vm6  ;;  %vm1427_vm13 = vcmask 261120   ;;  %vm4476_vm10 = vcmp.lt.s32.totalorder %v3439_v23, 111 }
 0x3be   : > { %2689 = vmatpush1.bf16.msk.msra.mxu1 %vm3943_vm4, %v2688_v30  ;;  %v1844_v26 = vsel %vm4473_vm9, %v3058_v14, %v3053_v6  ;;  %v1914_v24 = vpack.c.bf16 %v1839_v0, %v1838_v52  ;;  %vm4474_vm5 = vmmov %vm4464_vm6 }
 0x3bf   : > { %2692 = vmatprep.subr.msk.bf16.mxu1 %vm3842_vm11, %v2691_v50  ;;  %v1841_v29 = vsel %vm4474_vm5, %v3054_v1, %v3059_v13  ;;  %vm4475_vm6 = vmmov %vm4474_vm5  ;;  %v2712_v27 = vpack.c.bf16 %v1845_v21, %v1844_v26 }
 0x3c0   : > { %v1840_v43 = vsel %vm4475_vm6, %v3053_v6, %v3058_v14  ;;  %vm4477_vm9 = vmmov %vm4476_vm10  ;;  %v1503_v6 = vld [vmem:[%s4288_s19 + $0x8] sm:$0xff] }
 0x3c1   : > { %v1916_v41 = vpack.c.bf16 %v1841_v29, %v1840_v43  ;;  %vm4478_vm5 = vmmov %vm4477_vm9 }
 0x3c2   : > { %2695 = vmatpush1.bf16.msk.msra.mxu1 %vm3943_vm4, %v2694_v42  ;;  %vm4479_vm6 = vmmov %vm4478_vm5 }
 0x3c3   : > { %2698 = vmatprep.subr.msk.bf16.mxu1 %vm3966_vm2, %v2697_v59 }
 0x3c6   : > { %2701 = vmatpush1.bf16.msk.msra.mxu1 %vm3892_vm7, %v2700_v8 }
 0x3c7   : > { %2704 = vmatprep.subr.msk.bf16.mxu1 %vm3966_vm2, %v2703_v10 }
 0x3ca   : > { %2707 = vmatpush1.bf16.msk.msra.mxu1 %vm3892_vm7, %v2706_v7 }
 0x3cb   : > { %2710 = vmatprep.subr.msk.bf16.mxu1 %vm3997_vm8, %v2709_v18 }
 0x3ce   : > { %1966 = vmatpush1.bf16.msra.mxu1 %v1914_v24 }
 0x3cf   : > { %2713 = vmatprep.subr.msk.bf16.mxu1 %vm3997_vm8, %v2712_v27  ;;  %vm4036_vm8 = vmpackc.low %vm3562_vm15, %vm3562_vm15 }
 0x3d0   : > { %vm4483_vm15 = vmmov %vm4478_vm5 }
 0x3d2   : > { %1968 = vmatpush1.bf16.msra.mxu1 %v1916_v41  ;;  %v4076_v41 = vld [vmem:[%s3376_s28] sm:$0xff] }
 0x3d5   : > { %1970 = vmatmul.mubr.bf16.vlgmr.msra.gmra.mrb[12].mxu1 %v2639_v48 }
 0x3d6   : > { %2010 = vmatprep.mubr.bf16.mxu1 %v3217_v5 }
 0x3e5   : > { %v1420_v25 = vpop.xlane.xlu0 %1419 }
 0x3e6   : > { %v1424_v38 = vmul.f32 0.00390625, %v1420_v25  ;;  %v4080_v25 = vld [vmem:[%s3376_s28 + $0x8] sm:$0xff]  ;;  %s4529_s28 = sld [smem:[#allocation16_spill]] }
 0x3e9   : > { %v3062_v28 = vpop.permute.xlu0 %3061 }
 0x3ea   : > { %v1417_v35 = vpop.xlane.xlu1 %1416  ;;  %v3064_v34 = vunpack.i.h.bf16 %v3062_v28  ;;  %v3063_v37 = vunpack.i.l.bf16 %v3062_v28 }
 0x3eb   : > { %v1423_v44 = vmul.f32 0.00390625, %v1417_v35 }
 0x3ed   : > { %v2848_v30 = vpack.c.bf16 %v1424_v38, %v1423_v44  ;;  %v3077_v40 = vpop.permute.xlu0 %3076  ;;  %v3166_v44 = vld [vmem:[%s4283_s14] sm:$0xff]  }
 0x3ee   : > { %v3067_v31 = vpop.permute.xlu1 %3066  ;;  %v3079_v59 = vunpack.i.h.bf16 %v3077_v40  ;;  %v3078_v60 = vunpack.i.l.bf16 %v3077_v40 }
 0x3ef   : > { %v3069_v47 = vunpack.i.h.bf16 %v3067_v31  ;;  %v3068_v50 = vunpack.i.l.bf16 %v3067_v31  ;;  %2849 = vmatpush3.bf16.msra.mxu0 %v2848_v30  ;;  %v1505_v31 = vld [vmem:[%s4289_s20 + $0x8] sm:$0xff] }
 0x3f1   : > { %v1870_v51 = vsel %vm4476_vm10, %v3063_v37, %v3068_v50  ;;  %v1871_v53 = vsel %vm4477_vm9, %v3064_v34, %v3069_v47  ;;  %v1874_v63 = vsel %vm4478_vm5, %v3068_v50, %v3063_v37  ;;  %v1875_v55 = vsel %vm4479_vm6, %v3069_v47, %v3064_v34  ;;  %vm4482_vm10 = vmmov %vm4478_vm5  ;;  %v1504_v50 = vld [vmem:[%s4289_s20] sm:$0xff] }
 0x3f2   : > { %v2715_v19 = vpack.c.bf16 %v1875_v55, %v1874_v63  ;;  %v2718_v42 = vpack.c.bf16 %v1871_v53, %v1870_v51  ;;  %v3072_v57 = vpop.permute.xlu1 %3071  ;;  %2825 = vmatmul.mubr.msk.f32.vlgmr.msra.gmra.mrb[2].mxu0 %vm1427_vm13, %v1425_v54  ;;  %vm4484_vm9 = vmmov %vm4478_vm5  ;;  %vm4485_vm6 = vcmask 15360  }
 0x3f3   : > { %v3074_v61 = vunpack.i.h.bf16 %v3072_v57  ;;  %v3073_v2 = vunpack.i.l.bf16 %v3072_v57  ;;  %2829 = vmatprep.mubr.msk.f32.mxu0 %vm4485_vm6, %v1502_v32 }
 0x3f4   : > { %2716 = vmatprep.subr.msk.bf16.mxu1 %vm4036_vm8, %v2715_v19 }
 0x3f5   : > { %v1872_v15 = vsel %vm4482_vm10, %v3073_v2, %v3078_v60  ;;  %v1873_v3 = vsel %vm4483_vm15, %v3074_v61, %v3079_v59  ;;  %v1876_v17 = vsel %vm4484_vm9, %v3078_v60, %v3073_v2  ;;  %v1877_v58 = vsel %vm4478_vm5, %v3079_v59, %v3074_v61  ;;  %2719 = vmatpush1.bf16.msk.msra.mxu1 %vm3943_vm4, %v2718_v42  ;;  %vm4488_vm15 = vmmov %vm4485_vm6  ;;  %v2031_v21 = vpop.permute.xlu0 %2030 }
 0x3f6   : > { %v2721_v8 = vpack.c.bf16 %v1877_v58, %v1876_v17  ;;  %v2724_v33 = vpack.c.bf16 %v1873_v3, %v1872_v15  ;;  %v2023_v7 = vpop.permute.xlu1 %2022  ;;  %vm4489_vm9 = vcmask 1043456   ;;  %vm4491_vm6 = vcmask 64512  }
 0x3f7   : > { %vm4490_vm5 = vmmov %vm4489_vm9 }
 0x3f8   : > { %2722 = vmatprep.subr.msk.bf16.mxu1 %vm4036_vm8, %v2721_v8 }
 0x3f9   : > { %2725 = vmatpush1.bf16.msk.msra.mxu1 %vm3943_vm4, %v2724_v33 }
 0x3fa   : > { %v2103_v54 = vpop.permute.xlu1 %2102  ;;  %v2108_v40 = vpop.permute.xlu0 %2107 }
 0x3fc   : > { %2726 = vmatmul.mubr.msk.bf16.vlgmr.msra.gmra.mrb[12].mxu1 %vm1427_vm13, %v3165_v36  ;;  %vm4486_vm13 = vcmask 1041408  }
 0x3fd   : > { %vm4487_vm10 = vmmov %vm4486_vm13 }
 0x3fe   : > { %v2119_v19 = vpop.permute.xlu1 %2118  ;;  %v2124_v2 = vpop.permute.xlu0 %2123 }
 0x4c5   : > { %v1497_v10 = vpop.f32.mrb[2].mxu0 }
 0x4c6   : > { %v1498_v13 = vadd.f32 %v1497_v10, %v1426_v9  ;;  %v2826_v14 = vpop.f32.mrb[3].mxu0 }
 0x4c8   : > { %v1501_v1 = vmax.f32 %v1498_v13, 0.0 }
 0x4ca   : > { %2827 = vmatprep.subr.msk.mxu0 %vm4486_vm13, %v1501_v1  ;;  %vm4492_vm13 = vcmask 130048  }
 0x4cb   : > { %2828 = vmatpush3.msk.msra.mxu0 %vm4487_vm10, %v1501_v1 }
 0x4cc   : > { %2830 = vmatmul.mubr.msk.f32.vlgmr.msra.gmra.mrb[8].mxu0 %vm4488_vm15, %v1503_v6 }
 0x4cd   : > { %2087 = vmatprep.mubr.bf16.mxu0 %v3217_v5 }
 0x4cf   : > { %v2012_v0 = vpop.f32.mrb[12].mxu1 }
 0x4d0   : > { %v2025_v52 = vmul.f32 %v2023_v7, %v2012_v0  ;;  %v2014_v18 = vpop.f32.mrb[13].mxu1 }
 0x4d1   : > { %v2026_v26 = vmul.f32 %v2023_v7, %v2014_v18  ;;  %v2016_v24 = vpop.f32.mrb[14].mxu1  ;;  %v2138_v18 = vld [vmem:[%s4292_s23] sm:$0x3] }
 0x4d2   : > { %v2033_v29 = vadd.f32 %v2031_v21, %v2025_v52  ;;  %v2017_v43 = vpop.f32.mrb[15].mxu1 }
 0x4d3   : > { %v2034_v27 = vadd.f32 %v2031_v21, %v2026_v26 }
 0x4d4   : > { %v2035_v48 = vadd.f32 %v4076_v41, %v2033_v29 }
 0x4d5   : > { %v2036_v28 = vadd.f32 %v4080_v25, %v2034_v27 }
 0x4d6   : > { %v2039_v35 = vpack.c.bf16 %v2035_v48, %v2035_v48 }
 0x4d7   : > { %v2040_v5 = vpack.c.bf16 %v2036_v28, %v2036_v28 }
 0x4d8   : > { %v2050_v38 = vsel %vm4489_vm9, %v2039_v35, 0 }
 0x4d9   : > { %2728 = vmatprep.subr.msk.bf16.mxu0 %vm4490_vm5, %v2040_v5  ;;  %vm4497_vm5 = vcmp.lt.s32.totalorder %v3439_v23, 16 }
 0x4da   : > { %2056 = vmatpush1.bf16.msra.mxu0 %v2050_v38 }
 0x4db   : > { %2850 = vmatprep.subr.bf16.mxu0 %v3219_v22 }
 0x4dd   : > { %2729 = vmatmul.mubr.msk.bf16.vlgmr.msra.gmra.mrb[12].mxu0 %vm4491_vm6, %v3166_v44  ;;  %vm4498_vm6 = vmmov %vm4497_vm5 }
 0x4de   : > { %2836 = vmatprep.mubr.msk.f32.mxu0 %vm4392_vm0, %v3211_v4 }
 0x59f   : > { %v2831_v30 = vpop.f32.mrb[8].mxu0 }
 0x5a0   : > { %v1581_v34 = vpop.f32.mrb[9].mxu0  ;;  %v1587_v37 = vadd.f32 %v2831_v30, %v1505_v31 }
 0x5a1   : > { %v1582_v22 = vadd.f32 %v1581_v34, %v1504_v50 }
 0x5a2   : > { %v2638_v47 = vmul.f32 -1.442695, %v1587_v37 }
 0x5a3   : > { %v2637_v51 = vmul.f32 -1.442695, %v1582_v22 }
 0x5a4   : > { %3185 = vpow2.f32 %v2638_v47 }
 0x5a5   : > { %3187 = vpow2.f32 %v2637_v51 }
 0x5ae   : > { %v3186_v17 = vpop.eup %3185 }
 0x5af   : > { %v1597_v36 = vadd.f32 1.0, %v3186_v17  ;;  %v3188_v9 = vpop.eup %3187 }
 0x5b0   : > { %v2089_v53 = vpop.f32.mrb[12].mxu0  ;;  %v1596_v10 = vadd.f32 1.0, %v3188_v9 }
 0x5b1   : > { %v2110_v63 = vmul.f32 %v2103_v54, %v2089_v53  ;;  %v2091_v55 = vpop.f32.mrb[13].mxu0  ;;  %3189 = vrcp.f32 %v1597_v36 }
 0x5b2   : > { %v2111_v42 = vmul.f32 %v2103_v54, %v2091_v55  ;;  %v2093_v57 = vpop.f32.mrb[14].mxu0  ;;  %3191 = vrcp.f32 %v1596_v10  ;;  %v2139_v55 = vld [vmem:[%s4293_s24] sm:$0x3] }
 0x5b3   : > { %v2126_v59 = vadd.f32 %v2119_v19, %v2110_v63  ;;  %v2112_v60 = vmul.f32 %v2108_v40, %v2093_v57  ;;  %v2095_v61 = vpop.f32.mrb[15].mxu0 }
 0x5b4   : > { %v2127_v15 = vadd.f32 %v2119_v19, %v2111_v42  ;;  %v2113_v3 = vmul.f32 %v2108_v40, %v2095_v61  ;;  %v4146_v42 = vld [vmem:[%s4290_s21] sm:$0xff] }
 0x5b5   : > { %v2128_v58 = vadd.f32 %v2124_v2, %v2112_v60  ;;  %v2735_v36 = vcombine.high %v4146_v42, %v4146_v42  ;;  %v2734_v62 = vcombine.low %v4146_v42, %v4146_v42 }
 0x5b6   : > { %v2129_v8 = vadd.f32 %v2124_v2, %v2113_v3  ;;  %v2130_v33 = vadd.f32 %v2127_v15, %v2126_v59 }
 0x5b8   : > { %2131 = vadd.xlane.f32.xlu1 %v2130_v33  ;;  %v2133_v32 = vadd.f32 %v2129_v8, %v2128_v58 }
 0x5ba   : > { %2134 = vadd.xlane.f32.xlu0 %v2133_v32 }
 0x5bb   : > { %v3190_v13 = vpop.eup %3189 }
 0x5bc   : > { %v3192_v14 = vpop.eup %3191 }
 0x5c9   : > { %2305 = vperm.xlu1 %2919, %v3190_v13  }
 0x5d0   : > { %2300 = vperm.xlu0 %2918, %v3192_v14   ;;  %v2214_v14 = vld [vmem:[%s4294_s25] sm:$0xff] }
 0x645   : > { %v2132_v1 = vpop.xlane.xlu1 %2131 }
 0x646   : > { %v2136_v7 = vmul.f32 0.00390625, %v2132_v1 }
 0x647   : > { %v2135_v6 = vpop.xlane.xlu0 %2134 }
 0x648   : > { %v2137_v0 = vmul.f32 0.00390625, %v2135_v6 }
 0x649   : > { %v2306_v21 = vpop.permute.xlu1 %2305 }
 0x64a   : > { %v2851_v52 = vpack.c.bf16 %v2137_v0, %v2136_v7  ;;  %v4103_v24 = vmul.f32 %v2306_v21, %v2128_v58  ;;  %v4105_v29 = vmul.f32 %v2306_v21, %v2129_v8 }
 0x64c   : > { %2852 = vmatpush3.bf16.msra.mxu0 %v2851_v52 }
 0x64d   : > { %2839 = vmatprep.subr.mxu0 %v3211_v4 }
 0x64f   : > { %2837 = vmatmul.mubr.msk.f32.vlgmr.msra.gmra.mrb[10].mxu0 %vm4492_vm13, %v2138_v18  ;;  %v2301_v26 = vpop.permute.xlu0 %2300  ;;  %vm4499_vm13 = vmmov %vm4497_vm5 }
 0x650   : > { %v4107_v43 = vmul.f32 %v2301_v26, %v2126_v59  ;;  %v4109_v27 = vmul.f32 %v2301_v26, %v2127_v15  ;;  %2841 = vmatprep.mubr.msk.f32.mxu0 %vm4392_vm0, %v3211_v4  ;;  %v2459_v4 = vld [vmem:[%s4291_s22] sm:$0xff]  ;;  %vm4493_vm0 = vcmp.lt.s32.totalorder %v3439_v23, 17 }
 0x651   : > { %vm4494_vm10 = vmmov %vm4493_vm0 }
 0x652   : > { %v3100_v48 = vpack.i.bf16 %v4105_v29, %v4109_v27  ;;  %v3080_v28 = vpack.i.bf16 %v4103_v24, %v4107_v43  ;;  %v2449_v35 = vpack.c.bf16 %v4105_v29, %v4109_v27  ;;  %v2448_v5 = vpack.c.bf16 %v4103_v24, %v4107_v43  ;;  %vm4495_vm15 = vmmov %vm4493_vm0 }
 0x653   : > { %vm4496_vm9 = vmmov %vm4493_vm0 }
 0x654   : > { %3101 = vrot.lane.b32.xlu0 %v3100_v48, %s4398_s1  ;;  %3081 = vrot.lane.b32.xlu1 %v3080_v28, %s4398_s1  ;;  %s818_s1 = scalar_lea.vmem %s4532_s30, %s4531_s3 }
 0x658   : > { %3106 = vrot.lane.b32.xlu0 %v3100_v48, %s4399_s8  ;;  %3086 = vrot.lane.b32.xlu1 %v3080_v28, %s4399_s8 }
 0x65c   : > { %3111 = vrot.lane.b32.xlu0 %v3100_v48, %s4400_s0  ;;  %3091 = vrot.lane.b32.xlu1 %v3080_v28, %s4400_s0 }
 0x660   : > { %3116 = vrot.lane.b32.xlu0 %v3100_v48, %s4401_s2  ;;  %3096 = vrot.lane.b32.xlu1 %v3080_v28, %s4401_s2 }
 0x664   : > { %3141 = vrot.lane.b32.xlu0 %v3100_v48, %s4402_s7  ;;  %3121 = vrot.lane.b32.xlu1 %v3080_v28, %s4402_s7 }
 0x668   : > { %3146 = vrot.lane.b32.xlu0 %v3100_v48, %s4403_s6  ;;  %3126 = vrot.lane.b32.xlu1 %v3080_v28, %s4403_s6 }
 0x66c   : > { %3151 = vrot.lane.b32.xlu0 %v3100_v48, %s4404_s5  ;;  %3131 = vrot.lane.b32.xlu1 %v3080_v28, %s4404_s5 }
 0x670   : > { %3156 = vrot.lane.b32.xlu0 %v3100_v48, %s4405_s10  ;;  %3136 = vrot.lane.b32.xlu1 %v3080_v28, %s4405_s10 }
 0x674   : > { %2462 = vperm.xlu1 %2919, %v2459_v4  }
 0x6c6   : > { %v3102_v38 = vpop.permute.xlu0 %3101  ;;  %v3082_v44 = vpop.permute.xlu1 %3081 }
 0x6c7   : > { %v3104_v47 = vunpack.i.h.bf16 %v3102_v38  ;;  %v3084_v50 = vunpack.i.h.bf16 %v3082_v44  ;;  %v3103_v54 = vunpack.i.l.bf16 %v3102_v38  ;;  %v3083_v22 = vunpack.i.l.bf16 %v3082_v44 }
 0x6c9   : > { %v2321_v57 = vsel %vm4493_vm0, %v3084_v50, %v3104_v47  ;;  %v2323_v61 = vsel %vm4494_vm10, %v3104_v47, %v3084_v50  ;;  %v2320_v2 = vsel %vm4495_vm15, %v3083_v22, %v3103_v54  ;;  %v2322_v15 = vsel %vm4496_vm9, %v3103_v54, %v3083_v22  ;;  %vm4500_vm0 = vmmov %vm4497_vm5 }
 0x6ca   : > { %v3107_v30 = vpop.permute.xlu0 %3106  ;;  %v3087_v31 = vpop.permute.xlu1 %3086  ;;  %v2737_v1 = vpack.c.bf16 %v2321_v57, %v2320_v2  ;;  %v2740_v6 = vpack.c.bf16 %v2323_v61, %v2322_v15  ;;  %vm4501_vm10 = vcmask 1041408   ;;  %vm4502_vm15 = vcmask 15360  }
 0x6cb   : > { %v3109_v40 = vunpack.i.h.bf16 %v3107_v30  ;;  %v3108_v51 = vunpack.i.l.bf16 %v3107_v30  ;;  %v3089_v53 = vunpack.i.h.bf16 %v3087_v31  ;;  %v3088_v63 = vunpack.i.l.bf16 %v3087_v31 }
 0x6cc   : > { %vm4503_vm9 = vcmp.lt.s32.totalorder %v3439_v23, 15 }
 0x6cd   : > { %v2336_v8 = vsel %vm4497_vm5, %v3088_v63, %v3108_v51  ;;  %v2337_v33 = vsel %vm4498_vm6, %v3089_v53, %v3109_v40  ;;  %v2339_v7 = vsel %vm4499_vm13, %v3109_v40, %v3089_v53  ;;  %v2338_v0 = vsel %vm4500_vm0, %v3108_v51, %v3088_v63  ;;  %vm4504_vm5 = vmmov %vm4503_vm9 }
 0x6ce   : > { %v3112_v34 = vpop.permute.xlu0 %3111  ;;  %v3092_v37 = vpop.permute.xlu1 %3091  ;;  %v2443_v52 = vpack.c.bf16 %v2337_v33, %v2336_v8  ;;  %vm4505_vm6 = vcmask 130048   ;;  %v2743_v30 = vpack.c.bf16 %v2339_v7, %v2338_v0  ;;  %vm4506_vm13 = vmmov %vm4504_vm5 }
 0x6cf   : > { %v3114_v58 = vunpack.i.h.bf16 %v3112_v34  ;;  %v3113_v32 = vunpack.i.l.bf16 %v3112_v34  ;;  %v3094_v9 = vunpack.i.h.bf16 %v3092_v37  ;;  %v3093_v10 = vunpack.i.l.bf16 %v3092_v37  ;;  %vm4507_vm0 = vmmov %vm4504_vm5 }
 0x6d1   : > { %v2353_v38 = vsel %vm4503_vm9, %v3094_v9, %v3114_v58  ;;  %v2352_v44 = vsel %vm4504_vm5, %v3093_v10, %v3113_v32  ;;  %v2355_v31 = vsel %vm4506_vm13, %v3114_v58, %v3094_v9  ;;  %v2354_v34 = vsel %vm4507_vm0, %v3113_v32, %v3093_v10 }
 0x6d2   : > { %v3117_v19 = vpop.permute.xlu0 %3116  ;;  %v3097_v59 = vpop.permute.xlu1 %3096  ;;  %v2746_v37 = vpack.c.bf16 %v2353_v38, %v2352_v44  ;;  %v2749_v22 = vpack.c.bf16 %v2355_v31, %v2354_v34 }
 0x6d3   : > { %v3119_v18 = vunpack.i.h.bf16 %v3117_v19  ;;  %v3118_v21 = vunpack.i.l.bf16 %v3117_v19  ;;  %v3099_v26 = vunpack.i.h.bf16 %v3097_v59  ;;  %v3098_v48 = vunpack.i.l.bf16 %v3097_v59 }
 0x6d6   : > { %v3142_v28 = vpop.permute.xlu0 %3141  ;;  %v3122_v4 = vpop.permute.xlu1 %3121 }
 0x6d7   : > { %v3144_v63 = vunpack.i.h.bf16 %v3142_v28  ;;  %v3124_v19 = vunpack.i.h.bf16 %v3122_v4  ;;  %v3123_v57 = vunpack.i.l.bf16 %v3122_v4 }
 0x6da   : > { %v3147_v16 = vpop.permute.xlu0 %3146  ;;  %v3127_v54 = vpop.permute.xlu1 %3126 }
 0x6db   : > { %v3149_v15 = vunpack.i.h.bf16 %v3147_v16  ;;  %v3128_v58 = vunpack.i.l.bf16 %v3127_v54 }
 0x6de   : > { %v3152_v61 = vpop.permute.xlu0 %3151  ;;  %v3132_v2 = vpop.permute.xlu1 %3131 }
 0x6df   : > { %v3154_v33 = vunpack.i.h.bf16 %v3152_v61  ;;  %v3134_v32 = vunpack.i.h.bf16 %v3132_v2  ;;  %v3133_v9 = vunpack.i.l.bf16 %v3132_v2 }
 0x6e2   : > { %v3157_v29 = vpop.permute.xlu0 %3156  ;;  %v3137_v27 = vpop.permute.xlu1 %3136 }
 0x6e3   : > { %v3159_v43 = vunpack.i.h.bf16 %v3157_v29  ;;  %v3139_v0 = vunpack.i.h.bf16 %v3137_v27 }
 0x722   : > { %v2209_v60 = vpop.f32.mrb[10].mxu0 }
 0x723   : > { %v2210_v3 = vadd.f32 %v2209_v60, %v2139_v55  ;;  %v2838_v17 = vpop.f32.mrb[11].mxu0  ;;  %v3143_v55 = vunpack.i.l.bf16 %v3142_v28 }
 0x724   : > { %v3129_v17 = vunpack.i.h.bf16 %v3127_v54 }
 0x725   : > { %v2213_v13 = vmax.f32 %v2210_v3, 0.0  ;;  %v3148_v3 = vunpack.i.l.bf16 %v3147_v16 }
 0x727   : > { %2840 = vmatpush3.msk.msra.mxu0 %vm4501_vm10, %v2213_v13  ;;  %vm4508_vm10 = vcmp.lt.s32.totalorder %v3439_v23, 1 }
 0x728   : > { %2842 = vmatmul.mubr.msk.f32.vlgmr.msra.gmra.mrb[16].mxu0 %vm4502_vm15, %v2214_v14  ;;  %2738 = vmatprep.subr.msk.bf16.mxu0 %vm3749_vm12, %v2737_v1  ;;  %v2369_v47 = vsel %vm4508_vm10, %v3099_v26, %v3119_v18  ;;  %vm4509_vm15 = vmmov %vm4508_vm10 }
 0x729   : > { %2741 = vmatpush1.bf16.msk.msra.mxu0 %vm3756_vm3, %v2740_v6  ;;  %2778 = vmatprep.mubr.msk.bf16.mxu0 %vm4505_vm6, %v2735_v36  ;;  %v2368_v50 = vsel %vm4509_vm15, %v3098_v48, %v3118_v21  ;;  %vm4510_vm3 = vmmov %vm4508_vm10  ;;  %v3153_v36 = vunpack.i.l.bf16 %v3152_v61  ;;  %vm4516_vm6 = vcmp.lt.s32.totalorder %v3439_v23, 113  ;;  %vm4520_vm15 = vcmp.lt.s32.totalorder %v3439_v23, 112 }
 0x72a   : > { %2476 = vmatprep.subr.bf16.mxu0 %v2443_v52  ;;  %v2371_v40 = vsel %vm4510_vm3, %v3119_v18, %v3099_v26  ;;  %vm4511_vm9 = vmmov %vm4510_vm3  ;;  %v2752_v53 = vpack.c.bf16 %v2369_v47, %v2368_v50  ;;  %v2403_v10 = vsel %vm4516_vm6, %v3149_v15, %v3129_v17  ;;  %v2419_v7 = vsel %vm4520_vm15, %v3154_v33, %v3134_v32 }
 0x72b   : > { %v2370_v51 = vsel %vm4511_vm9, %v3118_v21, %v3098_v48  ;;  %vm4517_vm13 = vmmov %vm4516_vm6  ;;  %v3138_v52 = vunpack.i.l.bf16 %v3137_v27 }
 0x72c   : > { %v2755_v46 = vpack.c.bf16 %v2371_v40, %v2370_v51  ;;  %v2402_v13 = vsel %vm4517_vm13, %v3148_v3, %v3128_v58  ;;  %vm4518_vm0 = vmmov %vm4516_vm6 }
 0x72d   : > { %2744 = vmatpush1.bf16.msk.msra.mxu0 %vm3821_vm1, %v2743_v30  ;;  %vm4512_vm1 = vcmp.lt.s32.totalorder %v3439_v23, 127  ;;  %v2401_v14 = vsel %vm4518_vm0, %v3129_v17, %v3149_v15  ;;  %vm4519_vm10 = vmmov %vm4518_vm0  ;;  %v2764_v6 = vpack.c.bf16 %v2403_v10, %v2402_v13 }
 0x72e   : > { %2747 = vmatprep.subr.msk.bf16.mxu0 %vm3842_vm11, %v2746_v37  ;;  %v2387_v59 = vsel %vm4512_vm1, %v3144_v63, %v3124_v19  ;;  %vm4513_vm5 = vmmov %vm4512_vm1  ;;  %v2400_v1 = vsel %vm4519_vm10, %v3128_v58, %v3148_v3 }
 0x72f   : > { %v2386_v60 = vsel %vm4513_vm5, %v3143_v55, %v3123_v57  ;;  %vm4521_vm3 = vmmov %vm4520_vm15  ;;  %v2767_v12 = vpack.c.bf16 %v2401_v14, %v2400_v1 }
 0x730   : > { %v2758_v8 = vpack.c.bf16 %v2387_v59, %v2386_v60  ;;  %v2418_v24 = vsel %vm4521_vm3, %v3153_v36, %v3133_v9  ;;  %vm4523_vm9 = vmmov %vm4521_vm3 }
 0x731   : > { %2750 = vmatpush1.bf16.msk.msra.mxu0 %vm3861_vm14, %v2749_v22  ;;  %vm4515_vm14 = vmmov %vm4512_vm1  ;;  %v2416_v21 = vsel %vm4523_vm9, %v3133_v9, %v3153_v36  ;;  %v2770_v26 = vpack.c.bf16 %v2419_v7, %v2418_v24  ;;  %v2463_v22 = vpop.permute.xlu1 %2462 }
 0x732   : > { %2753 = vmatprep.subr.msk.bf16.mxu0 %vm3749_vm12, %v2752_v53  ;;  %vm4514_vm12 = vmmov %vm4512_vm1  ;;  %v2384_v20 = vsel %vm4515_vm14, %v3123_v57, %v3143_v55  ;;  %vm4524_vm1 = vcmp.lt.s32.totalorder %v3439_v23, 111 }
 0x733   : > { %v2385_v11 = vsel %vm4514_vm12, %v3124_v19, %v3144_v63  ;;  %v2435_v48 = vsel %vm4524_vm1, %v3159_v43, %v3139_v0  ;;  %vm4525_vm5 = vmmov %vm4524_vm1  ;;  %vm4526_vm12 = vnez %v4470_v39  ;;  %v2215_v39 = vld [vmem:[%s4529_s28] sm:$0xff] }
 0x734   : > { %vm4528_vm14 = vmmov %vm4524_vm1 }
 0x735   : > { %2756 = vmatpush1.bf16.msk.msra.mxu0 %vm3892_vm7, %v2755_v46 }
 0x736   : > { %2482 = vmatprep.subr.bf16.mxu0 %v2449_v35  ;;  %v2761_v35 = vpack.c.bf16 %v2385_v11, %v2384_v20 }
 0x739   : > { %2483 = vmatpush1.bf16.msra.mxu0 %v2448_v5  ;;  %v3158_v5 = vunpack.i.l.bf16 %v3157_v29 }
 0x73a   : > { %2759 = vmatprep.subr.msk.bf16.mxu0 %vm3842_vm11, %v2758_v8  ;;  %vm4522_vm11 = vmmov %vm4521_vm3 }
 0x73b   : > { %v2417_v18 = vsel %vm4522_vm11, %v3134_v32, %v3154_v33  ;;  %v2434_v28 = vsel %vm4525_vm5, %v3158_v5, %v3138_v52  ;;  %v2432_v38 = vsel %vm4528_vm14, %v3138_v52, %v3158_v5 }
 0x73c   : > { %v2454_v49 = vpack.c.bf16 %v2417_v18, %v2416_v21  ;;  %v2773_v44 = vpack.c.bf16 %v2435_v48, %v2434_v28 }
 0x73d   : > { %2762 = vmatpush1.bf16.msk.msra.mxu0 %vm3943_vm4, %v2761_v35 }
 0x73e   : > { %2765 = vmatprep.subr.msk.bf16.mxu0 %vm3966_vm2, %v2764_v6  ;;  %vm4527_vm2 = vmmov %vm4524_vm1 }
 0x73f   : > { %v2433_v4 = vsel %vm4527_vm2, %v3139_v0, %v3159_v43 }
 0x740   : > { %v2776_v30 = vpack.c.bf16 %v2433_v4, %v2432_v38 }
 0x741   : > { %2768 = vmatpush1.bf16.msk.msra.mxu0 %vm3892_vm7, %v2767_v12 }
 0x742   : > { %2771 = vmatprep.subr.msk.bf16.mxu0 %vm4526_vm12, %v2770_v26 }
 0x745   : > { %2489 = vmatpush1.bf16.msra.mxu0 %v2454_v49 }
 0x746   : > { %2774 = vmatprep.subr.msk.bf16.mxu0 %vm4036_vm8, %v2773_v44 }
 0x749   : > { %2777 = vmatpush1.bf16.msk.msra.mxu0 %vm3943_vm4, %v2776_v30 }
 0x74c   : > { %2507 = vmatmul.mubr.bf16.vlgmr.msra.gmra.mrb[20].mxu0 %v2734_v62 }
 0x7fb   : > { %v2288_v31 = vpop.f32.mrb[16].mxu0 }
 0x7fc   : > { %v2289_v23 = vadd.f32 %v2288_v31, %v2215_v39  ;;  %v2843_v34 = vpop.f32.mrb[17].mxu0 }
 0x7fe   : > { %v2733_v37 = vmul.f32 -1.442695, %v2289_v23 }
 0x800   : > { %3193 = vpow2.f32 %v2733_v37 }
 0x80a   : > { %v3194_v47 = vpop.eup %3193 }
 0x80b   : > { %v2295_v56 = vadd.f32 1.0, %v3194_v47 }
 0x80d   : > { %3195 = vrcp.f32 %v2295_v56 }
 0x817   : > { %v3196_v50 = vpop.eup %3195 }
 0x818   : > { %2517 = vperm.xlu0 %2918, %v3196_v50  }
 0x81f   : > { %v2508_v42 = vpop.f32.mrb[20].mxu0 }
 0x820   : > { %v2510_v16 = vpop.f32.mrb[21].mxu0  ;;  %v2509_v40 = vadd.f32 %v2508_v42, %v2463_v22 }
 0x821   : > { %v2512_v45 = vpop.f32.mrb[22].mxu0  ;;  %v2511_v51 = vadd.f32 %v2510_v16, %v2463_v22 }
 0x822   : > { %v2513_v54 = vpop.f32.mrb[23].mxu0 }
 0x897   : > { %v2518_v53 = vpop.permute.xlu0 %2517 }
 0x898   : > { %v2520_v63 = vmul.f32 %v2518_v53, %v2509_v40  ;;  %v2521_v55 = vmul.f32 %v2518_v53, %v2511_v51 }
 0x89a   : > { %v2522_v19 = vadd.f32 %v4076_v41, %v2520_v63  ;;  %v2523_v57 = vadd.f32 %v4080_v25, %v2521_v55 }
 0x89c   : > { %v2524_v46 = vmax.f32 %v2522_v19, 0.0  ;;  %v2525_v59 = vmax.f32 %v2523_v57, 0.0 }
 0x89e   : > { %2526 = vst [vmem:[%s818_s1] sm:$0xff] %v2524_v46  ;;  %2527 = vst [vmem:[%s818_s1 + $0x8] sm:$0xff] %v2525_v59 }
 0x89f PF: > { %s4533_s8 = sld [smem:[#allocation2_spill]] }
 0x8a5   : > { %s37_s7 = sadd.s32 1, %s4533_s8  }
 0x8a6   : > { %p34_p4 = scmp.ge.s32.totalorder %s37_s7, 4  }
 0x8a8   :  { %36 = sbr.rel (!%p34_p4) target bundleno = 15 (0xf), region = 158 }

</bundles_post_ra>
